<compile_context>
chip_gen: v5e
topology: v5e:2x2
jax: 0.10.0
libtpu: 0.0.40
codegen_flags: <defaults>
</compile_context>

<pallas_src>
import math

import jax
import jax.numpy as jnp
from jax.experimental import pallas as pl
from jax.experimental.pallas import tpu as pltpu


def _round_up(x, m):
    return ((x + m - 1) // m) * m


_MAX_TK = 4096  # max K-chunk of w1 streamed per grid step (rows of w1)


# ----------------------------------------------------------------------------
# Hardware-conditional policy helpers (all guarded; fall back to safe defaults)
# ----------------------------------------------------------------------------
def _chip_kind():
    try:
        return jax.devices()[0].device_kind.lower()
    except Exception:
        return ""


def _vmem_limit_bytes():
    # ~3/4 of physical VMEM, capped at 96 MiB: 48 MiB on v7x (64 MiB VMEM),
    # 96 MiB on v5e/v6e (128 MiB VMEM).  Falls back to 48 MiB if the query
    # is unavailable.
    try:
        cap = pltpu.get_tpu_info().vmem_capacity_bytes
    except Exception:
        cap = 64 * 1024 * 1024
    return min((cap * 3) // 4, 96 * 1024 * 1024)


def _batch_tiling(B):
    """Returns (TM, num_batch_tiles, B_pad). Padding waste <= 7 rows/tile."""
    kind = _chip_kind()
    # v5e MXUs are 128-wide; TM>128 buys nothing and doubles live intermediates.
    max_tm = 128 if ("v5 lite" in kind or "v5e" in kind or "v5lite" in kind) else 512
    nb = max(1, pl.cdiv(B, max_tm))
    # v7x has 2 TensorCores; give the "parallel" batch axis >=2 steps once the
    # problem is compute-bound (below that, splitting only duplicates w1 DMA).
    if "v7" in kind and B >= 384:
        nb = max(nb, 2)
    tm = _round_up(pl.cdiv(B, nb), 8)
    return tm, nb, tm * nb


def _k_tiling(D):
    """Returns (TK, num_k_tiles, D_pad) for streaming w1 over its rows."""
    nk = max(1, pl.cdiv(D, _MAX_TK))
    if nk == 1:
        # Single chunk: use the full (possibly non-128-multiple) D, no padding.
        return D, 1, D
    tk = _round_up(pl.cdiv(D, nk), 128)
    return tk, nk, tk * nk


# ----------------------------------------------------------------------------
# Kernel: one (batch tile, K chunk) step of the fused discriminator forward.
# ----------------------------------------------------------------------------
def _discriminator_kernel(x_ref, w1_ref, b1_ref, w2_ref, b2_ref,
                          w3_ref, b3_ref, out_ref, acc_ref):
    # x_ref : (TM, TK) f32      w1_ref: (TK, 512) bf16    b1_ref: (1, 512) f32
    # w2_ref: (512, 256) bf16   b2_ref: (1, 256) f32
    # w3_ref: (1, 256)  bf16    b3_ref: (1,) f32 (SMEM scalar)
    # acc_ref: (TM, 512) f32 scratch, persists across the K axis.
    k = pl.program_id(1)

    @pl.when(k == 0)
    def _():
        acc_ref[...] = jnp.zeros_like(acc_ref)

    # Layer 1 partial: stream this TK-chunk of w1 through the MXU while the
    # next chunk's DMA is in flight.  Per-tile f32->bf16 cast of x is VPU work
    # hidden under the MXU.
    x = x_ref[...].astype(jnp.bfloat16)
    acc_ref[...] += jnp.dot(x, w1_ref[...], preferred_element_type=jnp.float32)

    @pl.when(k == pl.num_programs(1) - 1)
    def _():
        # Layer 1 epilogue: bias + LeakyReLU(0.2) in f32.
        h1 = acc_ref[...] + b1_ref[...]
        h1 = jnp.where(h1 > 0, h1, 0.2 * h1)

        # Layer 2: Linear(512, 256) + LeakyReLU(0.2).
        h2 = jnp.dot(h1.astype(jnp.bfloat16), w2_ref[...],
                     preferred_element_type=jnp.float32)
        h2 = h2 + b2_ref[...]
        h2 = jnp.where(h2 > 0, h2, 0.2 * h2)

        # Layer 3: Linear(256, 1) + Sigmoid.  N=1 matmul would waste the MXU,
        # so do a lane-wise multiply + cross-lane reduction on the VPU/XLU.
        w3_row = w3_ref[...].astype(jnp.float32)                 # (1, 256)
        logit = jnp.sum(h2 * w3_row, axis=-1, keepdims=True) + b3_ref[0]
        out_ref[...] = jax.nn.sigmoid(logit)                     # (TM, 1)


# ----------------------------------------------------------------------------
# One-time parameter preparation (cast + layout + D padding for K-tiling).
# Do this ONCE and reuse across forward calls so the hot path never pays a
# full f32->bf16 weight conversion / HBM round trip.
# ----------------------------------------------------------------------------
def prepare_params(params):
    w1, b1, w2, b2, w3, b3 = params
    D, H1 = w1.shape
    H2 = w2.shape[1]
    _, _, D_pad = _k_tiling(D)

    w1_lo = w1.astype(jnp.bfloat16)
    if D_pad != D:
        w1_lo = jnp.pad(w1_lo, ((0, D_pad - D), (0, 0)))         # zero rows: no-op

    return (
        w1_lo,                                                    # (D_pad, 512) bf16
        b1.reshape(1, H1).astype(jnp.float32),                    # (1, 512) f32
        w2.astype(jnp.bfloat16),                                  # (512, 256) bf16
        b2.reshape(1, H2).astype(jnp.float32),                    # (1, 256) f32
        w3.reshape(1, H2).astype(jnp.bfloat16),                   # (1, 256) bf16
        b3.reshape(-1).astype(jnp.float32),                       # (1,)      f32
    )


# ----------------------------------------------------------------------------
# Forward wrapper
# ----------------------------------------------------------------------------
def discriminator_forward(img, prepared_params):
    """img: (B, C, H, W) float32 -> validity (B, 1) float32."""
    w1, b1, w2, b2, w3, b3 = prepared_params
    B = img.shape[0]
    x = img.reshape(B, -1).astype(jnp.float32)                    # == img.view(B, -1)
    D = x.shape[1]
    H1 = w1.shape[1]                                              # 512
    H2 = w2.shape[1]                                              # 256

    TM, nb, B_pad = _batch_tiling(B)
    TK, nk, D_pad = _k_tiling(D)
    assert w1.shape[0] == D_pad, "params were not prepared for this input size"

    if B_pad != B or D_pad != D:
        x = jnp.pad(x, ((0, B_pad - B), (0, D_pad - D)))

    out = pl.pallas_call(
        _discriminator_kernel,
        out_shape=jax.ShapeDtypeStruct((B_pad, 1), jnp.float32),
        grid=(nb, nk),                                            # reduction axis last
        in_specs=[
            pl.BlockSpec((TM, TK), lambda i, k: (i, k)),          # x: batch x K tiles
            pl.BlockSpec((TK, H1), lambda i, k: (k, 0)),          # w1: streamed over K
            pl.BlockSpec((1, H1), lambda i, k: (0, 0)),           # b1: VMEM-resident
            pl.BlockSpec((H1, H2), lambda i, k: (0, 0)),          # w2: VMEM-resident
            pl.BlockSpec((1, H2), lambda i, k: (0, 0)),           # b2
            pl.BlockSpec((1, H2), lambda i, k: (0, 0)),           # w3 (row)
            pl.BlockSpec(memory_space=pltpu.MemorySpace.SMEM),    # b3 scalar
        ],
        out_specs=pl.BlockSpec((TM, 1), lambda i, k: (i, 0)),
        scratch_shapes=[pltpu.VMEM((TM, H1), jnp.float32)],       # layer-1 accumulator
        compiler_params=pltpu.CompilerParams(
            dimension_semantics=("parallel", "arbitrary"),
            vmem_limit_bytes=_vmem_limit_bytes(),
        ),
    )(x, w1, b1, w2, b2, w3, b3)

    return out[:B]


# ----------------------------------------------------------------------------
# Deterministic parameter init (PyTorch nn.Linear default: U(-k, k), k=1/sqrt(fan_in))
# ----------------------------------------------------------------------------
def init_params(key, in_dim):
    dims = [(in_dim, 512), (512, 256), (256, 1)]
    params = []
    for (fan_in, fan_out) in dims:
        key, kw, kb = jax.random.split(key, 3)
        bound = 1.0 / math.sqrt(fan_in)
        w = jax.random.uniform(kw, (fan_in, fan_out), jnp.float32, -bound, bound)
        b = jax.random.uniform(kb, (1, fan_out), jnp.float32, -bound, bound)
        params += [w, b]
    return tuple(params)


# ----------------------------------------------------------------------------
# Pure-JAX f32 reference for correctness check
# ----------------------------------------------------------------------------
def reference_forward(img, params):
    B = img.shape[0]
    x = img.reshape(B, -1)
    w1, b1, w2, b2, w3, b3 = params
    h = x @ w1 + b1
    h = jnp.where(h > 0, h, 0.2 * h)
    h = h @ w2 + b2
    h = jnp.where(h > 0, h, 0.2 * h)
    h = h @ w3 + b3
    return jax.nn.sigmoid(h)


if __name__ == "__main__":
    # Small shapes consistent with the module: img_shape = (channels, img_size, img_size)
    B, C, H, W = 2, 4, 16, 16          # flattened dim = 1024
    key = jax.random.PRNGKey(0)
    k_img, k_par = jax.random.split(key)

    img = jax.random.normal(k_img, (B, C, H, W), jnp.float32)
    params = init_params(k_par, C * H * W)
    prepared = prepare_params(params)   # one-time bf16 cast / layout / padding

    fwd = jax.jit(discriminator_forward)
    out = jax.block_until_ready(fwd(img, prepared))

    ref = reference_forward(img, params)
    assert out.shape == (B, 1), out.shape
    # bf16 MXU operands with f32 accumulation -> loosened tolerance vs f32 ref.
    assert jnp.allclose(out, ref, atol=2e-2, rtol=2e-2), (out, ref)

    print("KERNEL_OK")
</pallas_src>

<mosaic_0001>
module attributes {stable_mosaic.version = 11 : i64} {
  func.func @_discriminator_kernel(%arg0: i32, %arg1: i32, %arg2: memref<8x1024xf32, #tpu.memory_space<vmem>>, %arg3: memref<1024x512xbf16, #tpu.memory_space<vmem>>, %arg4: memref<1x512xf32, #tpu.memory_space<vmem>>, %arg5: memref<512x256xbf16, #tpu.memory_space<vmem>>, %arg6: memref<1x256xf32, #tpu.memory_space<vmem>>, %arg7: memref<1x256xbf16, #tpu.memory_space<vmem>>, %arg8: memref<1xf32, #tpu.memory_space<smem>>, %arg9: memref<8x1xf32, #tpu.memory_space<vmem>>, %arg10: memref<8x512xf32, #tpu.memory_space<vmem>>) attributes {dimension_semantics = [#tpu.dimension_semantics<parallel>, #tpu.dimension_semantics<arbitrary>], iteration_bounds = array<i64: 1, 1>, scalar_prefetch = 0 : i64, scratch_operands = 1 : i64, tpu.core_type = #tpu.core_type<tc>, window_params = [{transform_indices = @transform_0, window_bounds = array<i64: 8, 1024>}, {transform_indices = @transform_1, window_bounds = array<i64: 1024, 512>}, {pipeline_mode = #tpu.pipeline_mode<synchronous>, transform_indices = @transform_2, window_bounds = array<i64: 1, 512>}, {pipeline_mode = #tpu.pipeline_mode<synchronous>, transform_indices = @transform_3, window_bounds = array<i64: 512, 256>}, {pipeline_mode = #tpu.pipeline_mode<synchronous>, transform_indices = @transform_4, window_bounds = array<i64: 1, 256>}, {pipeline_mode = #tpu.pipeline_mode<synchronous>, transform_indices = @transform_5, window_bounds = array<i64: 1, 256>}, {transform_indices = @transform_6, window_bounds = array<i64: 1>}, {transform_indices = @transform_7, window_bounds = array<i64: 8, 1>}]} {
    %c0_i32 = arith.constant 0 : i32
    %0 = arith.cmpi eq, %arg1, %c0_i32 : i32
    %1 = arith.extui %0 : i1 to i32
    %c0_i32_0 = arith.constant 0 : i32
    %2 = arith.cmpi ne, %1, %c0_i32_0 : i32
    scf.if %2 {
      %cst_10 = arith.constant 0.000000e+00 : f32
      %13 = vector.broadcast %cst_10 : f32 to vector<8x512xf32>
      %c0_11 = arith.constant 0 : index
      %c0_12 = arith.constant 0 : index
      %14 = vector.load %arg10[%c0_11, %c0_12] : memref<8x512xf32, #tpu.memory_space<vmem>>, vector<8x512xf32>
      tpu.vector_store %arg10[%c0_11, %c0_12], %13 {strides = array<i32>} : memref<8x512xf32, #tpu.memory_space<vmem>>, vector<8x512xf32>,
    } else {
    }
    %c0 = arith.constant 0 : index
    %c0_1 = arith.constant 0 : index
    %3 = vector.load %arg2[%c0, %c0_1] : memref<8x1024xf32, #tpu.memory_space<vmem>>, vector<8x1024xf32>
    %4 = arith.truncf %3 : vector<8x1024xf32> to vector<8x1024xbf16>
    %c0_2 = arith.constant 0 : index
    %c0_3 = arith.constant 0 : index
    %5 = vector.load %arg10[%c0_2, %c0_3] : memref<8x512xf32, #tpu.memory_space<vmem>>, vector<8x512xf32>
    %c0_4 = arith.constant 0 : index
    %c0_5 = arith.constant 0 : index
    %6 = vector.load %arg3[%c0_4, %c0_5] : memref<1024x512xbf16, #tpu.memory_space<vmem>>, vector<1024x512xbf16>
    %cst = arith.constant dense<0.000000e+00> : vector<8x512xf32>
    %7 = tpu.matmul %4, %6, %cst {dimension_numbers = #tpu.dot_dimension_numbers<[1], [0], [0], [1], [0, 0, 1, 1], [], []>} : vector<8x1024xbf16>, vector<1024x512xbf16>, vector<8x512xf32> -> vector<8x512xf32>
    %8 = arith.addf %5, %7 : vector<8x512xf32>
    %c0_6 = arith.constant 0 : index
    %c0_7 = arith.constant 0 : index
    %9 = vector.load %arg10[%c0_6, %c0_7] : memref<8x512xf32, #tpu.memory_space<vmem>>, vector<8x512xf32>
    tpu.vector_store %arg10[%c0_6, %c0_7], %8 {strides = array<i32>} : memref<8x512xf32, #tpu.memory_space<vmem>>, vector<8x512xf32>,
    %c0_i32_8 = arith.constant 0 : i32
    %10 = arith.cmpi eq, %arg1, %c0_i32_8 : i32
    %11 = arith.extui %10 : i1 to i32
    %c0_i32_9 = arith.constant 0 : i32
    %12 = arith.cmpi ne, %11, %c0_i32_9 : i32
    scf.if %12 {
      %c0_10 = arith.constant 0 : index
      %c0_11 = arith.constant 0 : index
      %13 = vector.load %arg10[%c0_10, %c0_11] : memref<8x512xf32, #tpu.memory_space<vmem>>, vector<8x512xf32>
      %c0_12 = arith.constant 0 : index
      %c0_13 = arith.constant 0 : index
      %14 = vector.load %arg4[%c0_12, %c0_13] : memref<1x512xf32, #tpu.memory_space<vmem>>, vector<1x512xf32>
      %15 = vector.broadcast %14 : vector<1x512xf32> to vector<8x512xf32>
      %16 = arith.addf %13, %15 : vector<8x512xf32>
      %cst_14 = arith.constant 0.000000e+00 : f32
      %17 = vector.broadcast %cst_14 : f32 to vector<8x512xf32>
      %18 = arith.cmpf ogt, %16, %17 : vector<8x512xf32>
      %cst_15 = arith.constant 2.000000e-01 : f32
      %19 = vector.broadcast %cst_15 : f32 to vector<8x512xf32>
      %20 = arith.mulf %19, %16 : vector<8x512xf32>
      %21 = arith.select %18, %16, %20 : vector<8x512xi1>, vector<8x512xf32>
      %22 = arith.truncf %21 : vector<8x512xf32> to vector<8x512xbf16>
      %c0_16 = arith.constant 0 : index
      %c0_17 = arith.constant 0 : index
      %23 = vector.load %arg5[%c0_16, %c0_17] : memref<512x256xbf16, #tpu.memory_space<vmem>>, vector<512x256xbf16>
      %cst_18 = arith.constant dense<0.000000e+00> : vector<8x256xf32>
      %24 = tpu.matmul %22, %23, %cst_18 {dimension_numbers = #tpu.dot_dimension_numbers<[1], [0], [0], [1], [0, 0, 1, 1], [], []>} : vector<8x512xbf16>, vector<512x256xbf16>, vector<8x256xf32> -> vector<8x256xf32>
      %c0_19 = arith.constant 0 : index
      %c0_20 = arith.constant 0 : index
      %25 = vector.load %arg6[%c0_19, %c0_20] : memref<1x256xf32, #tpu.memory_space<vmem>>, vector<1x256xf32>
      %26 = vector.broadcast %25 : vector<1x256xf32> to vector<8x256xf32>
      %27 = arith.addf %24, %26 : vector<8x256xf32>
      %cst_21 = arith.constant 0.000000e+00 : f32
      %28 = vector.broadcast %cst_21 : f32 to vector<8x256xf32>
      %29 = arith.cmpf ogt, %27, %28 : vector<8x256xf32>
      %cst_22 = arith.constant 2.000000e-01 : f32
      %30 = vector.broadcast %cst_22 : f32 to vector<8x256xf32>
      %31 = arith.mulf %30, %27 : vector<8x256xf32>
      %32 = arith.select %29, %27, %31 : vector<8x256xi1>, vector<8x256xf32>
      %c0_23 = arith.constant 0 : index
      %c0_24 = arith.constant 0 : index
      %33 = vector.load %arg7[%c0_23, %c0_24] : memref<1x256xbf16, #tpu.memory_space<vmem>>, vector<1x256xbf16>
      %34 = arith.extf %33 : vector<1x256xbf16> to vector<1x256xf32>
      %35 = vector.broadcast %34 : vector<1x256xf32> to vector<8x256xf32>
      %36 = arith.mulf %32, %35 : vector<8x256xf32>
      %cst_25 = arith.constant dense<0.000000e+00> : vector<8xf32>
      %37 = vector.multi_reduction <add>, %36, %cst_25 [1] : vector<8x256xf32> to vector<8xf32>
      %38 = vector.shape_cast %37 : vector<8xf32> to vector<8x1xf32>
      %c0_26 = arith.constant 0 : index
      %39 = memref.load %arg8[%c0_26] : memref<1xf32, #tpu.memory_space<smem>>
      %40 = vector.broadcast %39 : f32 to vector<8x1xf32>
      %41 = arith.addf %38, %40 : vector<8x1xf32>
      %42 = arith.negf %41 : vector<8x1xf32>
      %43 = math.exp %42 : vector<8x1xf32>
      %cst_27 = arith.constant 1.000000e+00 : f32
      %44 = vector.broadcast %cst_27 : f32 to vector<8x1xf32>
      %45 = arith.addf %44, %43 : vector<8x1xf32>
      %46 = arith.divf %44, %45 : vector<8x1xf32>
      %c0_28 = arith.constant 0 : index
      %c0_29 = arith.constant 0 : index
      %47 = vector.load %arg9[%c0_28, %c0_29] : memref<8x1xf32, #tpu.memory_space<vmem>>, vector<8x1xf32>
      tpu.vector_store %arg9[%c0_28, %c0_29], %46 {strides = array<i32>} : memref<8x1xf32, #tpu.memory_space<vmem>>, vector<8x1xf32>,
    } else {
    }
    return
  }
  func.func @transform_0(%arg0: i32, %arg1: i32) -> (i32, i32) {
    %c0_i32 = arith.constant 0 : i32
    return %arg0, %arg1 : i32, i32
  }
  func.func @transform_1(%arg0: i32, %arg1: i32) -> (i32, i32) {
    %c0_i32 = arith.constant 0 : i32
    %c0_i32_0 = arith.constant 0 : i32
    return %arg1, %c0_i32 : i32, i32
  }
  func.func @transform_2(%arg0: i32, %arg1: i32) -> (i32, i32) {
    %c0_i32 = arith.constant 0 : i32
    %c0_i32_0 = arith.constant 0 : i32
    %c0_i32_1 = arith.constant 0 : i32
    return %c0_i32, %c0_i32_0 : i32, i32
  }
  func.func @transform_3(%arg0: i32, %arg1: i32) -> (i32, i32) {
    %c0_i32 = arith.constant 0 : i32
    %c0_i32_0 = arith.constant 0 : i32
    %c0_i32_1 = arith.constant 0 : i32
    return %c0_i32, %c0_i32_0 : i32, i32
  }
  func.func @transform_4(%arg0: i32, %arg1: i32) -> (i32, i32) {
    %c0_i32 = arith.constant 0 : i32
    %c0_i32_0 = arith.constant 0 : i32
    %c0_i32_1 = arith.constant 0 : i32
    return %c0_i32, %c0_i32_0 : i32, i32
  }
  func.func @transform_5(%arg0: i32, %arg1: i32) -> (i32, i32) {
    %c0_i32 = arith.constant 0 : i32
    %c0_i32_0 = arith.constant 0 : i32
    %c0_i32_1 = arith.constant 0 : i32
    return %c0_i32, %c0_i32_0 : i32, i32
  }
  func.func @transform_6(%arg0: i32, %arg1: i32) -> i32 {
    %c0_i32 = arith.constant 0 : i32
    %c0_i32_0 = arith.constant 0 : i32
    return %c0_i32 : i32
  }
  func.func @transform_7(%arg0: i32, %arg1: i32) -> (i32, i32) {
    %c0_i32 = arith.constant 0 : i32
    %c0_i32_0 = arith.constant 0 : i32
    return %arg0, %c0_i32 : i32, i32
  }
}

</mosaic_0001>

<bundles_post_ra>
// kernel: discriminator_forward.1
= control target key start
LH: loop header
LB: loop body
LE: loop exit
PB: predicated region body
PF: predicated region fallthrough
CT: control target
= control target key end

     0   :  { %13 = vsyncpa [#allocation5], 0  ;;  %s4462_s0 = inlined_call_operand.vmem [shape: f32[8,1024], index: 0, kind: input, shape index: {}]   ;;  %s4463_s1 = inlined_call_operand.hbm [shape: bf16[1024,512], index: 1, kind: input, shape index: {}]   ;;  %s4464_s2 = inlined_call_operand.vmem [shape: f32[1,512], index: 2, kind: input, shape index: {}]   ;;  %s4465_s3 = inlined_call_operand.hbm [shape: bf16[512,256], index: 3, kind: input, shape index: {}]   ;;  %s4466_s4 = inlined_call_operand.vmem [shape: f32[1,256], index: 4, kind: input, shape index: {}]   ;;  %s4467_s5 = inlined_call_operand.vmem [shape: bf16[1,256], index: 5, kind: input, shape index: {}]   ;;  %s4468_s6 = inlined_call_operand.<no memory space> [shape: f32[1], index: 6, kind: input, shape index: {}]   ;;  %s4469_s7 = inlined_call_operand.vmem [shape: f32[8,1], index: 7, kind: output, shape index: {}]  }
   0x1   :  { %s21_s26 = sshll.u32 %s4463_s1, 4  ;;  %s22_s26 = int_to_ptr.hbm [resolvable:$true] %s21_s26 }
   0x2   :  { %14 = vsyncpa [#allocation7], 0  ;;  %s4291_s27 = smov [#allocation4]   ;;  %s36_s8 = sshll.u32 %s4465_s3, 4  ;;  %s37_s8 = int_to_ptr.hbm [resolvable:$true] %s36_s8 }
   0x3   :  { %s23_s28 = sshll.u32 %s4291_s27, 4  ;;  %s4292_s9 = smov 256   ;;  %s24_s28 = int_to_ptr.vmem [resolvable:$true] %s23_s28 }
   0x4   :  { %s4293_s10 = smov 16   ;;  %s4294_s11 = smov [#allocation6]  }
   0x5   :  { %29 = dma.hbm_to_vmem [thread:$0]  %s22_s26, 32768, %s24_s28, [#allocation5], %s4292_s9, %s4292_s9, %s4293_s10  }
   0x6   :  { %s38_s12 = sshll.u32 %s4294_s11, 4  ;;  %s4295_s13 = smov 128   ;;  %s39_s12 = int_to_ptr.vmem [resolvable:$true] %s38_s12 }
   0x7   :  { %s4296_s14 = smov 8  }
   0x8   :  { %44 = dma.hbm_to_vmem [thread:$0]  %s37_s8, 8192, %s39_s12, [#allocation7], %s4295_s13, %s4295_s13, %s4296_s14  }
   0x9   :  { %4287 = dma.done.wait [#allocation5], 32768  }
   0xa   :  { %4288 = vsyncadd [#allocation5], 4294934528 }
   0xb   :  { %4289 = dma.done.wait [#allocation7], 8192  }
   0xc   :  { %4290 = vsyncadd [#allocation7], 4294959104  ;;  %v2742_v0 = vld [vmem:[#allocation4 + $0xe0] sm:$0xf]  ;;  %v3939_v1 = vld [vmem:[#allocation4 + $0xec] sm:$0xf0] }
   0xd   :  { %v2870_v2 = vld [vmem:[#allocation4 + $0x1e0] sm:$0xf]  ;;  %v2743_v3 = vor.u32 %v3939_v1, %v2742_v0  ;;  %v3971_v4 = vld [vmem:[#allocation4 + $0x1ec] sm:$0xf0]  ;;  %vm2620_vm9 = vcmask 7168  }
   0xe   :  { %v2998_v5 = vld [vmem:[#allocation4 + $0x2e0] sm:$0xf]  ;;  %v4003_v6 = vld [vmem:[#allocation4 + $0x2ec] sm:$0xf0]  ;;  %v2871_v7 = vor.u32 %v3971_v4, %v2870_v2 }
   0xf   :  { %v2999_v8 = vor.u32 %v4003_v6, %v2998_v5  ;;  %v3126_v9 = vld [vmem:[#allocation4 + $0x3e0] sm:$0xf]  ;;  %v4035_v10 = vld [vmem:[#allocation4 + $0x3ec] sm:$0xf0]  ;;  %1623 = vmatpush.bf16.msra.mxu0 %v2743_v3 }
  0x10   :  { %v2726_v11 = vld [vmem:[#allocation4 + $0xc0] sm:$0xf]  ;;  %v3127_v12 = vor.u32 %v4035_v10, %v3126_v9  ;;  %v3935_v13 = vld [vmem:[#allocation4 + $0xcc] sm:$0xf0]  ;;  %1636 = vmatpush.bf16.msra.mxu1 %v2871_v7 }
  0x11   :  { %v2854_v14 = vld [vmem:[#allocation4 + $0x1c0] sm:$0xf]  ;;  %v3967_v15 = vld [vmem:[#allocation4 + $0x1cc] sm:$0xf0]  ;;  %1649 = vmatpush.bf16.msra.mxu2 %v2999_v8  ;;  %v2727_v16 = vor.u32 %v3935_v13, %v2726_v11 }
  0x12   :  { %v2855_v17 = vor.u32 %v3967_v15, %v2854_v14  ;;  %v2982_v18 = vld [vmem:[#allocation4 + $0x2c0] sm:$0xf]  ;;  %v3999_v19 = vld [vmem:[#allocation4 + $0x2cc] sm:$0xf0]  ;;  %1662 = vmatpush.bf16.msra.mxu3 %v3127_v12 }
  0x13   :  { %v3110_v20 = vld [vmem:[#allocation4 + $0x3c0] sm:$0xf]  ;;  %v2983_v21 = vor.u32 %v3999_v19, %v2982_v18  ;;  %v4031_v22 = vld [vmem:[#allocation4 + $0x3cc] sm:$0xf0]  ;;  %1624 = vmatpush.bf16.msra.mxu0 %v2727_v16 }
  0x14   :  { %v2710_v23 = vld [vmem:[#allocation4 + $0xa0] sm:$0xf]  ;;  %v3931_v24 = vld [vmem:[#allocation4 + $0xac] sm:$0xf0]  ;;  %v3111_v25 = vor.u32 %v4031_v22, %v3110_v20  ;;  %1637 = vmatpush.bf16.msra.mxu1 %v2855_v17 }
  0x15   :  { %v2838_v26 = vld [vmem:[#allocation4 + $0x1a0] sm:$0xf]  ;;  %v3963_v27 = vld [vmem:[#allocation4 + $0x1ac] sm:$0xf0]  ;;  %v2711_v29 = vor.u32 %v3931_v24, %v2710_v23  ;;  %1650 = vmatpush.bf16.msra.mxu2 %v2983_v21 }
  0x16   :  { %v2966_v28 = vld [vmem:[#allocation4 + $0x2a0] sm:$0xf]  ;;  %v3995_v30 = vld [vmem:[#allocation4 + $0x2ac] sm:$0xf0]  ;;  %v2839_v33 = vor.u32 %v3963_v27, %v2838_v26  ;;  %1663 = vmatpush.bf16.msra.mxu3 %v3111_v25 }
  0x17   :  { %v3094_v31 = vld [vmem:[#allocation4 + $0x3a0] sm:$0xf]  ;;  %v4027_v32 = vld [vmem:[#allocation4 + $0x3ac] sm:$0xf0]  ;;  %v2967_v34 = vor.u32 %v3995_v30, %v2966_v28  ;;  %1625 = vmatpush.bf16.msra.mxu0 %v2711_v29 }
  0x18   :  { %v2694_v35 = vld [vmem:[#allocation4 + $0x80] sm:$0xf]  ;;  %v3927_v36 = vld [vmem:[#allocation4 + $0x8c] sm:$0xf0]  ;;  %v3095_v38 = vor.u32 %v4027_v32, %v3094_v31  ;;  %1638 = vmatpush.bf16.msra.mxu1 %v2839_v33 }
  0x19   :  { %v2822_v37 = vld [vmem:[#allocation4 + $0x180] sm:$0xf]  ;;  %v3959_v39 = vld [vmem:[#allocation4 + $0x18c] sm:$0xf0]  ;;  %v2695_v44 = vor.u32 %v3927_v36, %v2694_v35  ;;  %1651 = vmatpush.bf16.msra.mxu2 %v2967_v34 }
  0x1a   :  { %v2950_v40 = vld [vmem:[#allocation4 + $0x280] sm:$0xf]  ;;  %v3991_v41 = vld [vmem:[#allocation4 + $0x28c] sm:$0xf0]  ;;  %v2823_v45 = vor.u32 %v3959_v39, %v2822_v37  ;;  %1664 = vmatpush.bf16.msra.mxu3 %v3095_v38 }
  0x1b   :  { %v3078_v42 = vld [vmem:[#allocation4 + $0x380] sm:$0xf]  ;;  %v4023_v43 = vld [vmem:[#allocation4 + $0x38c] sm:$0xf0]  ;;  %v2951_v46 = vor.u32 %v3991_v41, %v2950_v40  ;;  %1626 = vmatpush.bf16.msra.mxu0 %v2695_v44 }
  0x1c   :  { %v2678_v47 = vld [vmem:[#allocation4 + $0x60] sm:$0xf]  ;;  %v3923_v48 = vld [vmem:[#allocation4 + $0x6c] sm:$0xf0]  ;;  %v3079_v50 = vor.u32 %v4023_v43, %v3078_v42  ;;  %1639 = vmatpush.bf16.msra.mxu1 %v2823_v45 }
  0x1d   :  { %v2806_v49 = vld [vmem:[#allocation4 + $0x160] sm:$0xf]  ;;  %v3955_v51 = vld [vmem:[#allocation4 + $0x16c] sm:$0xf0]  ;;  %v2679_v56 = vor.u32 %v3923_v48, %v2678_v47  ;;  %1652 = vmatpush.bf16.msra.mxu2 %v2951_v46 }
  0x1e   :  { %v2934_v52 = vld [vmem:[#allocation4 + $0x260] sm:$0xf]  ;;  %v3987_v53 = vld [vmem:[#allocation4 + $0x26c] sm:$0xf0]  ;;  %v2807_v57 = vor.u32 %v3955_v51, %v2806_v49  ;;  %1665 = vmatpush.bf16.msra.mxu3 %v3079_v50 }
  0x1f   :  { %v3062_v54 = vld [vmem:[#allocation4 + $0x360] sm:$0xf]  ;;  %v4019_v55 = vld [vmem:[#allocation4 + $0x36c] sm:$0xf0]  ;;  %v2935_v58 = vor.u32 %v3987_v53, %v2934_v52  ;;  %1627 = vmatpush.bf16.msra.mxu0 %v2679_v56 }
  0x20   :  { %v2662_v59 = vld [vmem:[#allocation4 + $0x40] sm:$0xf]  ;;  %v3919_v60 = vld [vmem:[#allocation4 + $0x4c] sm:$0xf0]  ;;  %v3063_v62 = vor.u32 %v4019_v55, %v3062_v54  ;;  %1640 = vmatpush.bf16.msra.mxu1 %v2807_v57 }
  0x21   :  { %v2790_v61 = vld [vmem:[#allocation4 + $0x140] sm:$0xf]  ;;  %v3951_v63 = vld [vmem:[#allocation4 + $0x14c] sm:$0xf0]  ;;  %v2663_v4 = vor.u32 %v3919_v60, %v2662_v59  ;;  %1653 = vmatpush.bf16.msra.mxu2 %v2935_v58 }
  0x22   :  { %v2918_v0 = vld [vmem:[#allocation4 + $0x240] sm:$0xf]  ;;  %v3983_v1 = vld [vmem:[#allocation4 + $0x24c] sm:$0xf0]  ;;  %v2791_v5 = vor.u32 %v3951_v63, %v2790_v61  ;;  %1666 = vmatpush.bf16.msra.mxu3 %v3063_v62 }
  0x23   :  { %v3046_v2 = vld [vmem:[#allocation4 + $0x340] sm:$0xf]  ;;  %v4015_v3 = vld [vmem:[#allocation4 + $0x34c] sm:$0xf0]  ;;  %v2919_v6 = vor.u32 %v3983_v1, %v2918_v0  ;;  %1628 = vmatpush.bf16.msra.mxu0 %v2663_v4  ;;  %v70_v1 = vld [vmem:[%s4462_s0 + $0x18] sm:$0xff] }
  0x24   :  { %v2646_v7 = vld [vmem:[#allocation4 + $0x20] sm:$0xf]  ;;  %v3915_v8 = vld [vmem:[#allocation4 + $0x2c] sm:$0xf0]  ;;  %v3047_v10 = vor.u32 %v4015_v3, %v3046_v2  ;;  %1641 = vmatpush.bf16.msra.mxu1 %v2791_v5  ;;  %v4356_v5 = vpack.c.bf16 %v70_v1, %v70_v1 }
  0x25   :  { %v2774_v9 = vld [vmem:[#allocation4 + $0x120] sm:$0xf]  ;;  %v3947_v11 = vld [vmem:[#allocation4 + $0x12c] sm:$0xf0]  ;;  %v2647_v16 = vor.u32 %v3915_v8, %v2646_v7  ;;  %1654 = vmatpush.bf16.msra.mxu2 %v2919_v6 }
  0x26   :  { %v2902_v12 = vld [vmem:[#allocation4 + $0x220] sm:$0xf]  ;;  %v3979_v13 = vld [vmem:[#allocation4 + $0x22c] sm:$0xf0]  ;;  %v2775_v19 = vor.u32 %v3947_v11, %v2774_v9  ;;  %1667 = vmatpush.bf16.msra.mxu3 %v3047_v10 }
  0x27   :  { %v3030_v14 = vld [vmem:[#allocation4 + $0x320] sm:$0xf]  ;;  %v4011_v15 = vld [vmem:[#allocation4 + $0x32c] sm:$0xf0]  ;;  %v2903_v20 = vor.u32 %v3979_v13, %v2902_v12  ;;  %1629 = vmatpush.bf16.msra.mxu0 %v2647_v16  ;;  %v68_v12 = vld [vmem:[%s4462_s0 + $0x8] sm:$0xff] }
  0x28   :  { %v2630_v17 = vld [vmem:[#allocation4] sm:$0xf]  ;;  %v3911_v18 = vld [vmem:[#allocation4 + $0xc] sm:$0xf0]  ;;  %v3031_v24 = vor.u32 %v4011_v15, %v3030_v14  ;;  %1642 = vmatpush.bf16.msra.mxu1 %v2775_v19 }
  0x29   :  { %v2758_v21 = vld [vmem:[#allocation4 + $0x100] sm:$0xf]  ;;  %v3943_v22 = vld [vmem:[#allocation4 + $0x10c] sm:$0xf0]  ;;  %v2631_v31 = vor.u32 %v3911_v18, %v2630_v17  ;;  %1655 = vmatpush.bf16.msra.mxu2 %v2903_v20  ;;  %v4363_v17 = vpack.c.bf16 %v68_v12, %v68_v12  ;;  %v4001_v12 = vld [vmem:[#allocation4 + $0x2e4] sm:$0xf] }
  0x2a   :  { %v2886_v23 = vld [vmem:[#allocation4 + $0x200] sm:$0xf]  ;;  %v3975_v25 = vld [vmem:[#allocation4 + $0x20c] sm:$0xf0]  ;;  %v2759_v35 = vor.u32 %v3943_v22, %v2758_v21  ;;  %1668 = vmatpush.bf16.msra.mxu3 %v3031_v24 }
  0x2b   :  { %v3014_v26 = vld [vmem:[#allocation4 + $0x300] sm:$0xf]  ;;  %v4007_v27 = vld [vmem:[#allocation4 + $0x30c] sm:$0xf0]  ;;  %v2887_v36 = vor.u32 %v3975_v25, %v2886_v23  ;;  %1630 = vmatpush.bf16.msra.mxu0 %v2631_v31 }
  0x2c   :  { %v3254_v28 = vld [vmem:[#allocation4 + $0x4e0] sm:$0xf]  ;;  %v4067_v29 = vld [vmem:[#allocation4 + $0x4ec] sm:$0xf0]  ;;  %v3015_v39 = vor.u32 %v4007_v27, %v3014_v26  ;;  %1643 = vmatpush.bf16.msra.mxu1 %v2759_v35 }
  0x2d   :  { %v3382_v30 = vld [vmem:[#allocation4 + $0x5e0] sm:$0xf]  ;;  %v4099_v32 = vld [vmem:[#allocation4 + $0x5ec] sm:$0xf0]  ;;  %v3255_v40 = vor.u32 %v4067_v29, %v3254_v28  ;;  %1656 = vmatpush.bf16.msra.mxu2 %v2887_v36 }
  0x2e   :  { %v3510_v33 = vld [vmem:[#allocation4 + $0x6e0] sm:$0xf]  ;;  %v4131_v34 = vld [vmem:[#allocation4 + $0x6ec] sm:$0xf0]  ;;  %v3383_v41 = vor.u32 %v4099_v32, %v3382_v30  ;;  %1669 = vmatpush.bf16.msra.mxu3 %v3015_v39 }
  0x2f   :  { %v3638_v37 = vld [vmem:[#allocation4 + $0x7e0] sm:$0xf]  ;;  %v4163_v38 = vld [vmem:[#allocation4 + $0x7ec] sm:$0xf0]  ;;  %v3511_v42 = vor.u32 %v4131_v34, %v3510_v33  ;;  %1675 = vmatpush.bf16.msrb.mxu0 %v3255_v40  ;;  %1644 = vmatmul.bf16.vlgmr.msra.gmra.mxu1 %v4363_v17 }
  0x30   :  { %v3238_v43 = vld [vmem:[#allocation4 + $0x4c0] sm:$0xf]  ;;  %v4063_v44 = vld [vmem:[#allocation4 + $0x4cc] sm:$0xf0]  ;;  %v3639_v46 = vor.u32 %v4163_v38, %v3638_v37  ;;  %1688 = vmatpush.bf16.msrb.mxu1 %v3383_v41 }
  0x31   :  { %v3366_v45 = vld [vmem:[#allocation4 + $0x5c0] sm:$0xf]  ;;  %v4095_v47 = vld [vmem:[#allocation4 + $0x5cc] sm:$0xf0]  ;;  %v3239_v52 = vor.u32 %v4063_v44, %v3238_v43  ;;  %1701 = vmatpush.bf16.msrb.mxu2 %v3511_v42  ;;  %1670 = vmatmul.bf16.vlgmr.msra.gmra.mxu3 %v4356_v5 }
  0x32   :  { %v3494_v48 = vld [vmem:[#allocation4 + $0x6c0] sm:$0xf]  ;;  %v4127_v49 = vld [vmem:[#allocation4 + $0x6cc] sm:$0xf0]  ;;  %v3367_v56 = vor.u32 %v4095_v47, %v3366_v45  ;;  %1714 = vmatpush.bf16.msrb.mxu3 %v3639_v46 }
  0x33   :  { %v3622_v50 = vld [vmem:[#allocation4 + $0x7c0] sm:$0xf]  ;;  %v4159_v51 = vld [vmem:[#allocation4 + $0x7cc] sm:$0xf0]  ;;  %v3495_v57 = vor.u32 %v4127_v49, %v3494_v48  ;;  %1676 = vmatpush.bf16.msrb.mxu0 %v3239_v52 }
  0x34   :  { %v3222_v53 = vld [vmem:[#allocation4 + $0x4a0] sm:$0xf]  ;;  %v4059_v54 = vld [vmem:[#allocation4 + $0x4ac] sm:$0xf0]  ;;  %v3623_v61 = vor.u32 %v4159_v51, %v3622_v50  ;;  %1689 = vmatpush.bf16.msrb.mxu1 %v3367_v56 }
  0x35   :  { %v3350_v55 = vld [vmem:[#allocation4 + $0x5a0] sm:$0xf]  ;;  %v4091_v58 = vld [vmem:[#allocation4 + $0x5ac] sm:$0xf0]  ;;  %v3223_v6 = vor.u32 %v4059_v54, %v3222_v53  ;;  %1702 = vmatpush.bf16.msrb.mxu2 %v3495_v57 }
  0x36   :  { %v3478_v59 = vld [vmem:[#allocation4 + $0x6a0] sm:$0xf]  ;;  %v69_v60 = vld [vmem:[%s4462_s0 + $0x10] sm:$0xff]  ;;  %v3351_v8 = vor.u32 %v4091_v58, %v3350_v55  ;;  %1715 = vmatpush.bf16.msrb.mxu3 %v3623_v61 }
  0x37   :  { %v4123_v62 = vld [vmem:[#allocation4 + $0x6ac] sm:$0xf0]  ;;  %v4346_v63 = vpack.c.bf16 %v69_v60, %v69_v60  ;;  %v67_v0 = vld [vmem:[%s4462_s0] sm:$0xff]  ;;  %1677 = vmatpush.bf16.msrb.mxu0 %v3223_v6 }
  0x38   :  { %v3606_v2 = vld [vmem:[#allocation4 + $0x7a0] sm:$0xf]  ;;  %v4155_v3 = vld [vmem:[#allocation4 + $0x7ac] sm:$0xf0]  ;;  %v4354_v4 = vpack.c.bf16 %v67_v0, %v67_v0  ;;  %v3479_v9 = vor.u32 %v4123_v62, %v3478_v59  ;;  %1690 = vmatpush.bf16.msrb.mxu1 %v3351_v8  ;;  %v2744_v8 = vld [vmem:[#allocation4 + $0xf0] sm:$0xf0] }
  0x39   :  { %v3206_v7 = vld [vmem:[#allocation4 + $0x480] sm:$0xf]  ;;  %1657 = vmatmul.bf16.vlgmr.msra.gmra.mxu2 %v4346_v63  ;;  %v4055_v10 = vld [vmem:[#allocation4 + $0x48c] sm:$0xf0]  ;;  %v3607_v13 = vor.u32 %v4155_v3, %v3606_v2 }
  0x3a   :  { %v3334_v11 = vld [vmem:[#allocation4 + $0x580] sm:$0xf]  ;;  %v4087_v14 = vld [vmem:[#allocation4 + $0x58c] sm:$0xf0]  ;;  %1631 = vmatmul.bf16.vlgmr.msra.gmra.mxu0 %v4354_v4  ;;  %v3207_v20 = vor.u32 %v4055_v10, %v3206_v7  ;;  %1703 = vmatpush.bf16.msrb.mxu2 %v3479_v9  ;;  %v3937_v7 = vld [vmem:[#allocation4 + $0xe4] sm:$0xf] }
  0x3b   :  { %v3462_v15 = vld [vmem:[#allocation4 + $0x680] sm:$0xf]  ;;  %v4119_v16 = vld [vmem:[#allocation4 + $0x68c] sm:$0xf0]  ;;  %v3335_v21 = vor.u32 %v4087_v14, %v3334_v11  ;;  %1716 = vmatpush.bf16.msrb.mxu3 %v3607_v13  ;;  %v3969_v9 = vld [vmem:[#allocation4 + $0x1e4] sm:$0xf] }
  0x3c   :  { %v3590_v18 = vld [vmem:[#allocation4 + $0x780] sm:$0xf]  ;;  %v4151_v19 = vld [vmem:[#allocation4 + $0x78c] sm:$0xf0]  ;;  %v3463_v22 = vor.u32 %v4119_v16, %v3462_v15  ;;  %1678 = vmatpush.bf16.msrb.mxu0 %v3207_v20  ;;  %v2872_v11 = vld [vmem:[#allocation4 + $0x1f0] sm:$0xf0] }
  0x3d   :  { %v3190_v23 = vld [vmem:[#allocation4 + $0x460] sm:$0xf]  ;;  %v4051_v24 = vld [vmem:[#allocation4 + $0x46c] sm:$0xf0]  ;;  %v3591_v26 = vor.u32 %v4151_v19, %v3590_v18  ;;  %1691 = vmatpush.bf16.msrb.mxu1 %v3335_v21  ;;  %v3000_v13 = vld [vmem:[#allocation4 + $0x2f0] sm:$0xf0]  ;;  %v2747_v21 = vor.u32 %v3937_v7, %v2744_v8 }
  0x3e   :  { %v3318_v25 = vld [vmem:[#allocation4 + $0x560] sm:$0xf]  ;;  %v4083_v27 = vld [vmem:[#allocation4 + $0x56c] sm:$0xf0]  ;;  %v3191_v32 = vor.u32 %v4051_v24, %v3190_v23  ;;  %1704 = vmatpush.bf16.msrb.mxu2 %v3463_v22  ;;  %v4033_v16 = vld [vmem:[#allocation4 + $0x3e4] sm:$0xf] }
  0x3f   :  { %v3446_v28 = vld [vmem:[#allocation4 + $0x660] sm:$0xf]  ;;  %v4115_v29 = vld [vmem:[#allocation4 + $0x66c] sm:$0xf0]  ;;  %v3319_v33 = vor.u32 %v4083_v27, %v3318_v25  ;;  %1717 = vmatpush.bf16.msrb.mxu3 %v3591_v26  ;;  %v3128_v18 = vld [vmem:[#allocation4 + $0x3f0] sm:$0xf0]  ;;  %v2875_v25 = vor.u32 %v3969_v9, %v2872_v11  ;;  %v3003_v26 = vor.u32 %v4001_v12, %v3000_v13 }
  0x40   :  { %v3574_v30 = vld [vmem:[#allocation4 + $0x760] sm:$0xf]  ;;  %v4147_v31 = vld [vmem:[#allocation4 + $0x76c] sm:$0xf0]  ;;  %v3447_v34 = vor.u32 %v4115_v29, %v3446_v28  ;;  %1679 = vmatpush.bf16.msrb.mxu0 %v3191_v32  ;;  %v3933_v22 = vld [vmem:[#allocation4 + $0xc4] sm:$0xf] }
  0x41   :  { %v3174_v35 = vld [vmem:[#allocation4 + $0x440] sm:$0xf]  ;;  %v4047_v36 = vld [vmem:[#allocation4 + $0x44c] sm:$0xf0]  ;;  %v3575_v38 = vor.u32 %v4147_v31, %v3574_v30  ;;  %1692 = vmatpush.bf16.msrb.mxu1 %v3319_v33  ;;  %v74_v24 = vld [vmem:[%s4462_s0 + $0x38] sm:$0xff]  ;;  %v3131_v30 = vor.u32 %v4033_v16, %v3128_v18 }
  0x42   :  { %v3302_v37 = vld [vmem:[#allocation4 + $0x540] sm:$0xf]  ;;  %v4079_v39 = vld [vmem:[#allocation4 + $0x54c] sm:$0xf0]  ;;  %v3175_v44 = vor.u32 %v4047_v36, %v3174_v35  ;;  %1705 = vmatpush.bf16.msrb.mxu2 %v3447_v34  ;;  %v2728_v27 = vld [vmem:[#allocation4 + $0xd0] sm:$0xf0] }
  0x43   :  { %v3430_v40 = vld [vmem:[#allocation4 + $0x640] sm:$0xf]  ;;  %v4111_v41 = vld [vmem:[#allocation4 + $0x64c] sm:$0xf0]  ;;  %v3303_v45 = vor.u32 %v4079_v39, %v3302_v37  ;;  %1718 = vmatpush.bf16.msrb.mxu3 %v3575_v38  ;;  %v3965_v28 = vld [vmem:[#allocation4 + $0x1c4] sm:$0xf]  ;;  %v4383_v38 = vpack.c.bf16 %v74_v24, %v74_v24  ;;  %v2731_v39 = vor.u32 %v3933_v22, %v2728_v27 }
  0x44   :  { %v3558_v42 = vld [vmem:[#allocation4 + $0x740] sm:$0xf]  ;;  %v4143_v43 = vld [vmem:[#allocation4 + $0x74c] sm:$0xf0]  ;;  %v3431_v46 = vor.u32 %v4111_v41, %v3430_v40  ;;  %1680 = vmatpush.bf16.msrb.mxu0 %v3175_v44  ;;  %v72_v29 = vld [vmem:[%s4462_s0 + $0x28] sm:$0xff] }
  0x45   :  { %v3158_v47 = vld [vmem:[#allocation4 + $0x420] sm:$0xf]  ;;  %v4043_v48 = vld [vmem:[#allocation4 + $0x42c] sm:$0xf0]  ;;  %v3559_v50 = vor.u32 %v4143_v43, %v3558_v42  ;;  %1693 = vmatpush.bf16.msrb.mxu1 %v3303_v45  ;;  %v2856_v32 = vld [vmem:[#allocation4 + $0x1d0] sm:$0xf0]  ;;  %v4385_v40 = vpack.c.bf16 %v72_v29, %v72_v29 }
  0x46   :  { %v3286_v49 = vld [vmem:[#allocation4 + $0x520] sm:$0xf]  ;;  %v4075_v51 = vld [vmem:[#allocation4 + $0x52c] sm:$0xf0]  ;;  %v3159_v56 = vor.u32 %v4043_v48, %v3158_v47  ;;  %1706 = vmatpush.bf16.msrb.mxu2 %v3431_v46  ;;  %v3997_v33 = vld [vmem:[#allocation4 + $0x2c4] sm:$0xf]  ;;  %v2859_v41 = vor.u32 %v3965_v28, %v2856_v32 }
  0x47   :  { %v3414_v52 = vld [vmem:[#allocation4 + $0x620] sm:$0xf]  ;;  %v4107_v53 = vld [vmem:[#allocation4 + $0x62c] sm:$0xf0]  ;;  %v3287_v59 = vor.u32 %v4075_v51, %v3286_v49  ;;  %1719 = vmatpush.bf16.msrb.mxu3 %v3559_v50  ;;  %v2984_v34 = vld [vmem:[#allocation4 + $0x2d0] sm:$0xf0] }
  0x48   :  { %v3542_v54 = vld [vmem:[#allocation4 + $0x720] sm:$0xf]  ;;  %v4139_v55 = vld [vmem:[#allocation4 + $0x72c] sm:$0xf0]  ;;  %v3415_v60 = vor.u32 %v4107_v53, %v3414_v52  ;;  %1681 = vmatpush.bf16.msrb.mxu0 %v3159_v56  ;;  %v4029_v35 = vld [vmem:[#allocation4 + $0x3c4] sm:$0xf]  ;;  %v2987_v42 = vor.u32 %v3997_v33, %v2984_v34 }
  0x49   :  { %v3142_v57 = vld [vmem:[#allocation4 + $0x400] sm:$0xf]  ;;  %v4039_v58 = vld [vmem:[#allocation4 + $0x40c] sm:$0xf0]  ;;  %v3543_v1 = vor.u32 %v4139_v55, %v3542_v54  ;;  %1694 = vmatpush.bf16.msrb.mxu1 %v3287_v59  ;;  %v3112_v36 = vld [vmem:[#allocation4 + $0x3d0] sm:$0xf0] }
  0x4a   :  { %v3270_v61 = vld [vmem:[#allocation4 + $0x500] sm:$0xf]  ;;  %v4071_v62 = vld [vmem:[#allocation4 + $0x50c] sm:$0xf0]  ;;  %v3143_v10 = vor.u32 %v4039_v58, %v3142_v57  ;;  %1707 = vmatpush.bf16.msrb.mxu2 %v3415_v60  ;;  %v3929_v43 = vld [vmem:[#allocation4 + $0xa4] sm:$0xf]  ;;  %v3115_v46 = vor.u32 %v4029_v35, %v3112_v36 }
  0x4b   :  { %v3398_v0 = vld [vmem:[#allocation4 + $0x600] sm:$0xf]  ;;  %v4103_v2 = vld [vmem:[#allocation4 + $0x60c] sm:$0xf0]  ;;  %v3271_v14 = vor.u32 %v4071_v62, %v3270_v61  ;;  %1720 = vmatpush.bf16.msrb.mxu3 %v3543_v1  ;;  %v2712_v44 = vld [vmem:[#allocation4 + $0xb0] sm:$0xf0] }
  0x4c   :  { %v3526_v3 = vld [vmem:[#allocation4 + $0x700] sm:$0xf]  ;;  %v4135_v6 = vld [vmem:[#allocation4 + $0x70c] sm:$0xf0]  ;;  %v3399_v15 = vor.u32 %v4103_v2, %v3398_v0  ;;  %1682 = vmatpush.bf16.msrb.mxu0 %v3143_v10  ;;  %v3961_v45 = vld [vmem:[#allocation4 + $0x1a4] sm:$0xf]  ;;  %v2715_v52 = vor.u32 %v3929_v43, %v2712_v44 }
  0x4d   :  { %v73_v19 = vld [vmem:[%s4462_s0 + $0x30] sm:$0xff]  ;;  %v3527_v20 = vor.u32 %v4135_v6, %v3526_v3  ;;  %v71_v23 = vld [vmem:[%s4462_s0 + $0x20] sm:$0xff]  ;;  %1695 = vmatpush.bf16.msrb.mxu1 %v3271_v14 }
  0x4e   :  { %v4379_v31 = vpack.c.bf16 %v73_v19, %v73_v19  ;;  %1708 = vmatpush.bf16.msrb.mxu2 %v3399_v15  ;;  %v4381_v37 = vpack.c.bf16 %v71_v23, %v71_v23  ;;  %v2840_v47 = vld [vmem:[#allocation4 + $0x1b0] sm:$0xf0]  ;;  %v3993_v48 = vld [vmem:[#allocation4 + $0x2a4] sm:$0xf] }
  0x4f   :  { %1721 = vmatpush.bf16.msrb.mxu3 %v3527_v20  ;;  %v2968_v49 = vld [vmem:[#allocation4 + $0x2b0] sm:$0xf0]  ;;  %v4025_v50 = vld [vmem:[#allocation4 + $0x3a4] sm:$0xf]  ;;  %v2843_v53 = vor.u32 %v3961_v45, %v2840_v47 }
  0x50   :  { %1727 = vmatpush.bf16.msra.mxu0 %v2747_v21  ;;  %v3096_v51 = vld [vmem:[#allocation4 + $0x3b0] sm:$0xf0]  ;;  %1696 = vmatmul.bf16.vlgmr.msrb.gmra.mxu1 %v4385_v40  ;;  %v2971_v54 = vor.u32 %v3993_v48, %v2968_v49  ;;  %v3925_v55 = vld [vmem:[#allocation4 + $0x84] sm:$0xf] }
  0x51   :  { %1740 = vmatpush.bf16.msra.mxu1 %v2875_v25  ;;  %1709 = vmatmul.bf16.vlgmr.msrb.gmra.mxu2 %v4379_v31  ;;  %v2696_v56 = vld [vmem:[#allocation4 + $0x90] sm:$0xf0]  ;;  %v3957_v57 = vld [vmem:[#allocation4 + $0x184] sm:$0xf]  ;;  %v3099_v58 = vor.u32 %v4025_v50, %v3096_v51 }
  0x52   :  { %1753 = vmatpush.bf16.msra.mxu2 %v3003_v26  ;;  %1683 = vmatmul.bf16.vlgmr.msrb.gmra.mxu0 %v4381_v37  ;;  %v2824_v59 = vld [vmem:[#allocation4 + $0x190] sm:$0xf0]  ;;  %v3989_v60 = vld [vmem:[#allocation4 + $0x284] sm:$0xf]  ;;  %v2699_v1 = vor.u32 %v3925_v55, %v2696_v56 }
  0x53   :  { %1766 = vmatpush.bf16.msra.mxu3 %v3131_v30  ;;  %v2952_v61 = vld [vmem:[#allocation4 + $0x290] sm:$0xf0]  ;;  %v4021_v62 = vld [vmem:[#allocation4 + $0x384] sm:$0xf]  ;;  %v2827_v2 = vor.u32 %v3957_v57, %v2824_v59 }
  0x54   :  { %1722 = vmatmul.bf16.vlgmr.msrb.gmra.mxu3 %v4383_v38  ;;  %1728 = vmatpush.bf16.msra.mxu0 %v2731_v39  ;;  %v3080_v0 = vld [vmem:[#allocation4 + $0x390] sm:$0xf0]  ;;  %v2955_v3 = vor.u32 %v3989_v60, %v2952_v61  ;;  %v3921_v6 = vld [vmem:[#allocation4 + $0x64] sm:$0xf] }
  0x55   :  { %1741 = vmatpush.bf16.msra.mxu1 %v2859_v41  ;;  %v2680_v7 = vld [vmem:[#allocation4 + $0x70] sm:$0xf0]  ;;  %v3953_v8 = vld [vmem:[#allocation4 + $0x164] sm:$0xf]  ;;  %v3083_v9 = vor.u32 %v4021_v62, %v3080_v0 }
  0x56   :  { %1754 = vmatpush.bf16.msra.mxu2 %v2987_v42  ;;  %v2808_v10 = vld [vmem:[#allocation4 + $0x170] sm:$0xf0]  ;;  %v3985_v11 = vld [vmem:[#allocation4 + $0x264] sm:$0xf]  ;;  %v2683_v15 = vor.u32 %v3921_v6, %v2680_v7 }
  0x57   :  { %1767 = vmatpush.bf16.msra.mxu3 %v3115_v46  ;;  %v2936_v12 = vld [vmem:[#allocation4 + $0x270] sm:$0xf0]  ;;  %v4017_v13 = vld [vmem:[#allocation4 + $0x364] sm:$0xf]  ;;  %v2811_v16 = vor.u32 %v3953_v8, %v2808_v10 }
  0x58   :  { %1729 = vmatpush.bf16.msra.mxu0 %v2715_v52  ;;  %v3064_v14 = vld [vmem:[#allocation4 + $0x370] sm:$0xf0]  ;;  %v2939_v18 = vor.u32 %v3985_v11, %v2936_v12  ;;  %v3917_v19 = vld [vmem:[#allocation4 + $0x44] sm:$0xf] }
  0x59   :  { %1742 = vmatpush.bf16.msra.mxu1 %v2843_v53  ;;  %v2664_v20 = vld [vmem:[#allocation4 + $0x50] sm:$0xf0]  ;;  %v3949_v21 = vld [vmem:[#allocation4 + $0x144] sm:$0xf]  ;;  %v3067_v22 = vor.u32 %v4017_v13, %v3064_v14 }
  0x5a   :  { %1755 = vmatpush.bf16.msra.mxu2 %v2971_v54  ;;  %v2792_v23 = vld [vmem:[#allocation4 + $0x150] sm:$0xf0]  ;;  %v3981_v24 = vld [vmem:[#allocation4 + $0x244] sm:$0xf]  ;;  %v2667_v28 = vor.u32 %v3917_v19, %v2664_v20 }
  0x5b   :  { %1768 = vmatpush.bf16.msra.mxu3 %v3099_v58  ;;  %v2920_v25 = vld [vmem:[#allocation4 + $0x250] sm:$0xf0]  ;;  %v4013_v26 = vld [vmem:[#allocation4 + $0x344] sm:$0xf]  ;;  %v2795_v29 = vor.u32 %v3949_v21, %v2792_v23 }
  0x5c   :  { %1730 = vmatpush.bf16.msra.mxu0 %v2699_v1  ;;  %v3048_v27 = vld [vmem:[#allocation4 + $0x350] sm:$0xf0]  ;;  %v2923_v30 = vor.u32 %v3981_v24, %v2920_v25  ;;  %v3913_v32 = vld [vmem:[#allocation4 + $0x24] sm:$0xf] }
  0x5d   :  { %1743 = vmatpush.bf16.msra.mxu1 %v2827_v2  ;;  %v2648_v33 = vld [vmem:[#allocation4 + $0x30] sm:$0xf0]  ;;  %v3945_v34 = vld [vmem:[#allocation4 + $0x124] sm:$0xf]  ;;  %v3051_v35 = vor.u32 %v4013_v26, %v3048_v27 }
  0x5e   :  { %1756 = vmatpush.bf16.msra.mxu2 %v2955_v3  ;;  %v2776_v36 = vld [vmem:[#allocation4 + $0x130] sm:$0xf0]  ;;  %v3977_v39 = vld [vmem:[#allocation4 + $0x224] sm:$0xf]  ;;  %v2651_v44 = vor.u32 %v3913_v32, %v2648_v33 }
  0x5f   :  { %1769 = vmatpush.bf16.msra.mxu3 %v3083_v9  ;;  %v2904_v41 = vld [vmem:[#allocation4 + $0x230] sm:$0xf0]  ;;  %v4009_v42 = vld [vmem:[#allocation4 + $0x324] sm:$0xf]  ;;  %v2779_v47 = vor.u32 %v3945_v34, %v2776_v36 }
  0x60   :  { %1731 = vmatpush.bf16.msra.mxu0 %v2683_v15  ;;  %v3032_v43 = vld [vmem:[#allocation4 + $0x330] sm:$0xf0]  ;;  %v3909_v45 = vld [vmem:[#allocation4 + $0x4] sm:$0xf]  ;;  %v2907_v48 = vor.u32 %v3977_v39, %v2904_v41 }
  0x61   :  { %1744 = vmatpush.bf16.msra.mxu1 %v2811_v16  ;;  %v2632_v46 = vld [vmem:[#allocation4 + $0x10] sm:$0xf0]  ;;  %v3941_v49 = vld [vmem:[#allocation4 + $0x104] sm:$0xf]  ;;  %v3035_v52 = vor.u32 %v4009_v42, %v3032_v43 }
  0x62   :  { %1757 = vmatpush.bf16.msra.mxu2 %v2939_v18  ;;  %v2760_v50 = vld [vmem:[#allocation4 + $0x110] sm:$0xf0]  ;;  %v3973_v51 = vld [vmem:[#allocation4 + $0x204] sm:$0xf]  ;;  %v2635_v59 = vor.u32 %v3909_v45, %v2632_v46 }
  0x63   :  { %1770 = vmatpush.bf16.msra.mxu3 %v3067_v22  ;;  %v2888_v53 = vld [vmem:[#allocation4 + $0x210] sm:$0xf0]  ;;  %v4005_v54 = vld [vmem:[#allocation4 + $0x304] sm:$0xf]  ;;  %v2763_v0 = vor.u32 %v3941_v49, %v2760_v50 }
  0x64   :  { %1732 = vmatpush.bf16.msra.mxu0 %v2667_v28  ;;  %v3016_v55 = vld [vmem:[#allocation4 + $0x310] sm:$0xf0]  ;;  %v4065_v56 = vld [vmem:[#allocation4 + $0x4e4] sm:$0xf]  ;;  %v2891_v1 = vor.u32 %v3973_v51, %v2888_v53 }
  0x65   :  { %1745 = vmatpush.bf16.msra.mxu1 %v2795_v29  ;;  %v3256_v57 = vld [vmem:[#allocation4 + $0x4f0] sm:$0xf0]  ;;  %v4097_v58 = vld [vmem:[#allocation4 + $0x5e4] sm:$0xf]  ;;  %v3019_v6 = vor.u32 %v4005_v54, %v3016_v55 }
  0x66   :  { %1758 = vmatpush.bf16.msra.mxu2 %v2923_v30  ;;  %v3384_v60 = vld [vmem:[#allocation4 + $0x5f0] sm:$0xf0]  ;;  %v4129_v61 = vld [vmem:[#allocation4 + $0x6e4] sm:$0xf]  ;;  %v3259_v7 = vor.u32 %v4065_v56, %v3256_v57 }
  0x67   :  { %1771 = vmatpush.bf16.msra.mxu3 %v3051_v35  ;;  %v3512_v62 = vld [vmem:[#allocation4 + $0x6f0] sm:$0xf0]  ;;  %v4161_v2 = vld [vmem:[#allocation4 + $0x7e4] sm:$0xf]  ;;  %v3387_v8 = vor.u32 %v4097_v58, %v3384_v60 }
  0x68   :  { %1733 = vmatpush.bf16.msra.mxu0 %v2651_v44  ;;  %v3640_v3 = vld [vmem:[#allocation4 + $0x7f0] sm:$0xf0]  ;;  %v3515_v9 = vor.u32 %v4129_v61, %v3512_v62  ;;  %v4061_v10 = vld [vmem:[#allocation4 + $0x4c4] sm:$0xf] }
  0x69   :  { %1746 = vmatpush.bf16.msra.mxu1 %v2779_v47  ;;  %v3240_v11 = vld [vmem:[#allocation4 + $0x4d0] sm:$0xf0]  ;;  %v4093_v12 = vld [vmem:[#allocation4 + $0x5c4] sm:$0xf]  ;;  %v3643_v13 = vor.u32 %v4161_v2, %v3640_v3 }
  0x6a   :  { %1759 = vmatpush.bf16.msra.mxu2 %v2907_v48  ;;  %v3368_v14 = vld [vmem:[#allocation4 + $0x5d0] sm:$0xf0]  ;;  %v4125_v15 = vld [vmem:[#allocation4 + $0x6c4] sm:$0xf]  ;;  %v3243_v20 = vor.u32 %v4061_v10, %v3240_v11 }
  0x6b   :  { %1772 = vmatpush.bf16.msra.mxu3 %v3035_v52  ;;  %v3496_v16 = vld [vmem:[#allocation4 + $0x6d0] sm:$0xf0]  ;;  %v4157_v18 = vld [vmem:[#allocation4 + $0x7c4] sm:$0xf]  ;;  %v3371_v21 = vor.u32 %v4093_v12, %v3368_v14 }
  0x6c   :  { %1734 = vmatpush.bf16.msra.mxu0 %v2635_v59  ;;  %v3624_v19 = vld [vmem:[#allocation4 + $0x7d0] sm:$0xf0]  ;;  %v3499_v22 = vor.u32 %v4125_v15, %v3496_v16  ;;  %v4057_v23 = vld [vmem:[#allocation4 + $0x4a4] sm:$0xf] }
  0x6d   :  { %1747 = vmatpush.bf16.msra.mxu1 %v2763_v0  ;;  %v3224_v24 = vld [vmem:[#allocation4 + $0x4b0] sm:$0xf0]  ;;  %v4089_v25 = vld [vmem:[#allocation4 + $0x5a4] sm:$0xf]  ;;  %v3627_v26 = vor.u32 %v4157_v18, %v3624_v19 }
  0x6e   :  { %1760 = vmatpush.bf16.msra.mxu2 %v2891_v1  ;;  %v3352_v27 = vld [vmem:[#allocation4 + $0x5b0] sm:$0xf0]  ;;  %v4121_v28 = vld [vmem:[#allocation4 + $0x6a4] sm:$0xf]  ;;  %v3227_v33 = vor.u32 %v4057_v23, %v3224_v24 }
  0x6f   :  { %1773 = vmatpush.bf16.msra.mxu3 %v3019_v6  ;;  %v3480_v29 = vld [vmem:[#allocation4 + $0x6b0] sm:$0xf0]  ;;  %v4153_v30 = vld [vmem:[#allocation4 + $0x7a4] sm:$0xf]  ;;  %1735 = vmatmul.bf16.vlgmr.msra.gmra.mxu0 %v4354_v4  ;;  %v3355_v34 = vor.u32 %v4089_v25, %v3352_v27 }
  0x70   :  { %1779 = vmatpush.bf16.msrb.mxu0 %v3259_v7  ;;  %v3608_v32 = vld [vmem:[#allocation4 + $0x7b0] sm:$0xf0]  ;;  %1748 = vmatmul.bf16.vlgmr.msra.gmra.mxu1 %v4363_v17  ;;  %v3483_v35 = vor.u32 %v4121_v28, %v3480_v29  ;;  %v4053_v36 = vld [vmem:[#allocation4 + $0x484] sm:$0xf] }
  0x71   :  { %1792 = vmatpush.bf16.msrb.mxu1 %v3387_v8  ;;  %1761 = vmatmul.bf16.vlgmr.msra.gmra.mxu2 %v4346_v63  ;;  %v3208_v39 = vld [vmem:[#allocation4 + $0x490] sm:$0xf0]  ;;  %v4085_v41 = vld [vmem:[#allocation4 + $0x584] sm:$0xf]  ;;  %v3611_v42 = vor.u32 %v4153_v30, %v3608_v32 }
  0x72   :  { %1805 = vmatpush.bf16.msrb.mxu2 %v3515_v9  ;;  %1774 = vmatmul.bf16.vlgmr.msra.gmra.mxu3 %v4356_v5  ;;  %v3336_v43 = vld [vmem:[#allocation4 + $0x590] sm:$0xf0]  ;;  %v4117_v44 = vld [vmem:[#allocation4 + $0x684] sm:$0xf]  ;;  %v3211_v48 = vor.u32 %v4053_v36, %v3208_v39  ;;  %v2750_v39 = vld [vmem:[#allocation4 + $0xe8] sm:$0xf] }
  0x73   :  { %1818 = vmatpush.bf16.msrb.mxu3 %v3643_v13  ;;  %v3464_v45 = vld [vmem:[#allocation4 + $0x690] sm:$0xf0]  ;;  %v4149_v46 = vld [vmem:[#allocation4 + $0x784] sm:$0xf]  ;;  %v3339_v49 = vor.u32 %v4085_v41, %v3336_v43  ;;  %v3940_v41 = vld [vmem:[#allocation4 + $0xf4] sm:$0xf0] }
  0x74   :  { %1780 = vmatpush.bf16.msrb.mxu0 %v3243_v20  ;;  %v3592_v47 = vld [vmem:[#allocation4 + $0x790] sm:$0xf0]  ;;  %v3467_v50 = vor.u32 %v4117_v44, %v3464_v45  ;;  %v4049_v51 = vld [vmem:[#allocation4 + $0x464] sm:$0xf]  ;;  %v3972_v44 = vld [vmem:[#allocation4 + $0x1f4] sm:$0xf0] }
  0x75   :  { %1793 = vmatpush.bf16.msrb.mxu1 %v3371_v21  ;;  %v3192_v52 = vld [vmem:[#allocation4 + $0x470] sm:$0xf0]  ;;  %v4081_v53 = vld [vmem:[#allocation4 + $0x564] sm:$0xf]  ;;  %v3595_v54 = vor.u32 %v4149_v46, %v3592_v47  ;;  %v3006_v45 = vld [vmem:[#allocation4 + $0x2e8] sm:$0xf] }
  0x76   :  { %1806 = vmatpush.bf16.msrb.mxu2 %v3499_v22  ;;  %v3320_v55 = vld [vmem:[#allocation4 + $0x570] sm:$0xf0]  ;;  %v4113_v56 = vld [vmem:[#allocation4 + $0x664] sm:$0xf]  ;;  %v3195_v60 = vor.u32 %v4049_v51, %v3192_v52  ;;  %v4004_v46 = vld [vmem:[#allocation4 + $0x2f4] sm:$0xf0]  ;;  %v2751_v52 = vor.u32 %v3940_v41, %v2750_v39 }
  0x77   :  { %1819 = vmatpush.bf16.msrb.mxu3 %v3627_v26  ;;  %v3448_v57 = vld [vmem:[#allocation4 + $0x670] sm:$0xf0]  ;;  %v4145_v58 = vld [vmem:[#allocation4 + $0x764] sm:$0xf]  ;;  %v3323_v61 = vor.u32 %v4081_v53, %v3320_v55  ;;  %v2734_v55 = vld [vmem:[#allocation4 + $0xc8] sm:$0xf] }
  0x78   :  { %1781 = vmatpush.bf16.msrb.mxu0 %v3227_v33  ;;  %v3576_v59 = vld [vmem:[#allocation4 + $0x770] sm:$0xf0]  ;;  %v3451_v62 = vor.u32 %v4113_v56, %v3448_v57  ;;  %v4045_v0 = vld [vmem:[#allocation4 + $0x444] sm:$0xf]  ;;  %v3936_v56 = vld [vmem:[#allocation4 + $0xd4] sm:$0xf0] }
  0x79   :  { %1794 = vmatpush.bf16.msrb.mxu1 %v3355_v34  ;;  %v3176_v1 = vld [vmem:[#allocation4 + $0x450] sm:$0xf0]  ;;  %v4077_v2 = vld [vmem:[#allocation4 + $0x544] sm:$0xf]  ;;  %v3579_v3 = vor.u32 %v4145_v58, %v3576_v59  ;;  %v2862_v57 = vld [vmem:[#allocation4 + $0x1c8] sm:$0xf] }
  0x7a   :  { %1807 = vmatpush.bf16.msrb.mxu2 %v3483_v35  ;;  %v3304_v6 = vld [vmem:[#allocation4 + $0x550] sm:$0xf0]  ;;  %v4109_v7 = vld [vmem:[#allocation4 + $0x644] sm:$0xf]  ;;  %v3179_v11 = vor.u32 %v4045_v0, %v3176_v1  ;;  %v3968_v59 = vld [vmem:[#allocation4 + $0x1d4] sm:$0xf0]  ;;  %v2735_v1 = vor.u32 %v3936_v56, %v2734_v55 }
  0x7b   :  { %1820 = vmatpush.bf16.msrb.mxu3 %v3611_v42  ;;  %v3432_v8 = vld [vmem:[#allocation4 + $0x650] sm:$0xf0]  ;;  %v4141_v9 = vld [vmem:[#allocation4 + $0x744] sm:$0xf]  ;;  %v3307_v12 = vor.u32 %v4077_v2, %v3304_v6  ;;  %v2878_v42 = vld [vmem:[#allocation4 + $0x1e8] sm:$0xf]  ;;  %v2863_v2 = vor.u32 %v3968_v59, %v2862_v57 }
  0x7c   :  { %1782 = vmatpush.bf16.msrb.mxu0 %v3211_v48  ;;  %v3560_v10 = vld [vmem:[#allocation4 + $0x750] sm:$0xf0]  ;;  %v3435_v13 = vor.u32 %v4109_v7, %v3432_v8  ;;  %v4041_v14 = vld [vmem:[#allocation4 + $0x424] sm:$0xf]  ;;  %v2879_v53 = vor.u32 %v3972_v44, %v2878_v42  ;;  %v4032_v0 = vld [vmem:[#allocation4 + $0x3d4] sm:$0xf0] }
  0x7d   :  { %1795 = vmatpush.bf16.msrb.mxu1 %v3339_v49  ;;  %v3160_v15 = vld [vmem:[#allocation4 + $0x430] sm:$0xf0]  ;;  %v4073_v16 = vld [vmem:[#allocation4 + $0x524] sm:$0xf]  ;;  %v3563_v18 = vor.u32 %v4141_v9, %v3560_v10  ;;  %v3134_v49 = vld [vmem:[#allocation4 + $0x3e8] sm:$0xf] }
  0x7e   :  { %1808 = vmatpush.bf16.msrb.mxu2 %v3467_v50  ;;  %v3288_v19 = vld [vmem:[#allocation4 + $0x530] sm:$0xf0]  ;;  %v4105_v20 = vld [vmem:[#allocation4 + $0x624] sm:$0xf]  ;;  %v3163_v24 = vor.u32 %v4041_v14, %v3160_v15  ;;  %v4036_v50 = vld [vmem:[#allocation4 + $0x3f4] sm:$0xf0] }
  0x7f   :  { %1821 = vmatpush.bf16.msrb.mxu3 %v3595_v54  ;;  %v3416_v21 = vld [vmem:[#allocation4 + $0x630] sm:$0xf0]  ;;  %v4137_v22 = vld [vmem:[#allocation4 + $0x724] sm:$0xf]  ;;  %v3291_v27 = vor.u32 %v4073_v16, %v3288_v19  ;;  %v3007_v54 = vor.u32 %v4004_v46, %v3006_v45  ;;  %v3135_v58 = vor.u32 %v4036_v50, %v3134_v49  ;;  %v2718_v6 = vld [vmem:[#allocation4 + $0xa8] sm:$0xf] }
  0x80   :  { %1783 = vmatpush.bf16.msrb.mxu0 %v3195_v60  ;;  %v3544_v23 = vld [vmem:[#allocation4 + $0x730] sm:$0xf0]  ;;  %v4037_v25 = vld [vmem:[#allocation4 + $0x404] sm:$0xf]  ;;  %v3419_v28 = vor.u32 %v4105_v20, %v3416_v21  ;;  %v2990_v60 = vld [vmem:[#allocation4 + $0x2c8] sm:$0xf] }
  0x81   :  { %1796 = vmatpush.bf16.msrb.mxu1 %v3323_v61  ;;  %v3144_v26 = vld [vmem:[#allocation4 + $0x410] sm:$0xf0]  ;;  %v4069_v29 = vld [vmem:[#allocation4 + $0x504] sm:$0xf]  ;;  %v3547_v33 = vor.u32 %v4137_v22, %v3544_v23  ;;  %v4000_v61 = vld [vmem:[#allocation4 + $0x2d4] sm:$0xf0] }
  0x82   :  { %1809 = vmatpush.bf16.msrb.mxu2 %v3451_v62  ;;  %v3272_v30 = vld [vmem:[#allocation4 + $0x510] sm:$0xf0]  ;;  %v4101_v32 = vld [vmem:[#allocation4 + $0x604] sm:$0xf]  ;;  %v3147_v43 = vor.u32 %v4037_v25, %v3144_v26  ;;  %v3118_v62 = vld [vmem:[#allocation4 + $0x3c8] sm:$0xf] }
  0x83   :  { %1822 = vmatpush.bf16.msrb.mxu3 %v3579_v3  ;;  %v3400_v34 = vld [vmem:[#allocation4 + $0x610] sm:$0xf0]  ;;  %v4133_v35 = vld [vmem:[#allocation4 + $0x704] sm:$0xf]  ;;  %v3275_v47 = vor.u32 %v4069_v29, %v3272_v30  ;;  %v2991_v3 = vor.u32 %v4000_v61, %v2990_v60  ;;  %v3932_v7 = vld [vmem:[#allocation4 + $0xb4] sm:$0xf0]  ;;  %v3119_v9 = vor.u32 %v4032_v0, %v3118_v62 }
  0x84   :  { %1784 = vmatpush.bf16.msrb.mxu0 %v3179_v11  ;;  %v3528_v36 = vld [vmem:[#allocation4 + $0x710] sm:$0xf0]  ;;  %v3403_v48 = vor.u32 %v4101_v32, %v3400_v34  ;;  %v2846_v8 = vld [vmem:[#allocation4 + $0x1a8] sm:$0xf]  ;;  %v3964_v10 = vld [vmem:[#allocation4 + $0x1b4] sm:$0xf0]  ;;  %v2719_v15 = vor.u32 %v3932_v7, %v2718_v6 }
  0x85   :  { %1797 = vmatpush.bf16.msrb.mxu1 %v3307_v12  ;;  %v3531_v51 = vor.u32 %v4133_v35, %v3528_v36  ;;  %v2974_v11 = vld [vmem:[#allocation4 + $0x2a8] sm:$0xf]  ;;  %v3996_v12 = vld [vmem:[#allocation4 + $0x2b4] sm:$0xf0]  ;;  %v2847_v16 = vor.u32 %v3964_v10, %v2846_v8 }
  0x86   :  { %1810 = vmatpush.bf16.msrb.mxu2 %v3435_v13  ;;  %v3102_v13 = vld [vmem:[#allocation4 + $0x3a8] sm:$0xf]  ;;  %v4028_v14 = vld [vmem:[#allocation4 + $0x3b4] sm:$0xf0] }
  0x87   :  { %1823 = vmatpush.bf16.msrb.mxu3 %v3563_v18  ;;  %v2975_v18 = vor.u32 %v3996_v12, %v2974_v11  ;;  %v2702_v19 = vld [vmem:[#allocation4 + $0x88] sm:$0xf]  ;;  %v3928_v20 = vld [vmem:[#allocation4 + $0x94] sm:$0xf0]  ;;  %v3103_v22 = vor.u32 %v4028_v14, %v3102_v13 }
  0x88   :  { %1785 = vmatpush.bf16.msrb.mxu0 %v3163_v24  ;;  %v2830_v21 = vld [vmem:[#allocation4 + $0x188] sm:$0xf]  ;;  %v3960_v23 = vld [vmem:[#allocation4 + $0x194] sm:$0xf0] }
  0x89   :  { %1798 = vmatpush.bf16.msrb.mxu1 %v3291_v27  ;;  %v2958_v24 = vld [vmem:[#allocation4 + $0x288] sm:$0xf]  ;;  %v3992_v25 = vld [vmem:[#allocation4 + $0x294] sm:$0xf0]  ;;  %v2831_v29 = vor.u32 %v3960_v23, %v2830_v21 }
  0x8a   :  { %1811 = vmatpush.bf16.msrb.mxu2 %v3419_v28  ;;  %v3086_v26 = vld [vmem:[#allocation4 + $0x388] sm:$0xf]  ;;  %v4024_v27 = vld [vmem:[#allocation4 + $0x394] sm:$0xf0]  ;;  %v2703_v28 = vor.u32 %v3928_v20, %v2702_v19  ;;  %v2959_v30 = vor.u32 %v3992_v25, %v2958_v24 }
  0x8b   :  { %1824 = vmatpush.bf16.msrb.mxu3 %v3547_v33  ;;  %v2686_v32 = vld [vmem:[#allocation4 + $0x68] sm:$0xf]  ;;  %v3924_v33 = vld [vmem:[#allocation4 + $0x74] sm:$0xf0]  ;;  %v3087_v35 = vor.u32 %v4024_v27, %v3086_v26 }
  0x8c   :  { %1786 = vmatpush.bf16.msrb.mxu0 %v3147_v43  ;;  %v2814_v34 = vld [vmem:[#allocation4 + $0x168] sm:$0xf]  ;;  %v3956_v36 = vld [vmem:[#allocation4 + $0x174] sm:$0xf0]  ;;  %v2687_v44 = vor.u32 %v3924_v33, %v2686_v32 }
  0x8d   :  { %1799 = vmatpush.bf16.msrb.mxu1 %v3275_v47  ;;  %v2942_v39 = vld [vmem:[#allocation4 + $0x268] sm:$0xf]  ;;  %v3988_v41 = vld [vmem:[#allocation4 + $0x274] sm:$0xf0]  ;;  %v2815_v45 = vor.u32 %v3956_v36, %v2814_v34 }
  0x8e   :  { %1812 = vmatpush.bf16.msrb.mxu2 %v3403_v48  ;;  %v3070_v42 = vld [vmem:[#allocation4 + $0x368] sm:$0xf]  ;;  %v4020_v43 = vld [vmem:[#allocation4 + $0x374] sm:$0xf0]  ;;  %v2943_v46 = vor.u32 %v3988_v41, %v2942_v39 }
  0x8f   :  { %1825 = vmatpush.bf16.msrb.mxu3 %v3531_v51  ;;  %1787 = vmatmul.bf16.vlgmr.msrb.gmra.mxu0 %v4381_v37  ;;  %v2670_v47 = vld [vmem:[#allocation4 + $0x48] sm:$0xf]  ;;  %v3920_v48 = vld [vmem:[#allocation4 + $0x54] sm:$0xf0]  ;;  %v3071_v50 = vor.u32 %v4020_v43, %v3070_v42 }
  0x90   :  { %1831 = vmatpush.bf16.msra.mxu0 %v2751_v52  ;;  %1800 = vmatmul.bf16.vlgmr.msrb.gmra.mxu1 %v4385_v40  ;;  %v2798_v49 = vld [vmem:[#allocation4 + $0x148] sm:$0xf]  ;;  %v3952_v51 = vld [vmem:[#allocation4 + $0x154] sm:$0xf0]  ;;  %v2671_v56 = vor.u32 %v3920_v48, %v2670_v47 }
  0x91   :  { %1844 = vmatpush.bf16.msra.mxu1 %v2879_v53  ;;  %1813 = vmatmul.bf16.vlgmr.msrb.gmra.mxu2 %v4379_v31  ;;  %v2926_v52 = vld [vmem:[#allocation4 + $0x248] sm:$0xf]  ;;  %v3984_v53 = vld [vmem:[#allocation4 + $0x254] sm:$0xf0]  ;;  %v2799_v57 = vor.u32 %v3952_v51, %v2798_v49 }
  0x92   :  { %1857 = vmatpush.bf16.msra.mxu2 %v3007_v54  ;;  %1826 = vmatmul.bf16.vlgmr.msrb.gmra.mxu3 %v4383_v38  ;;  %v3054_v54 = vld [vmem:[#allocation4 + $0x348] sm:$0xf]  ;;  %v4016_v55 = vld [vmem:[#allocation4 + $0x354] sm:$0xf0] }
  0x93   :  { %1870 = vmatpush.bf16.msra.mxu3 %v3135_v58  ;;  %v2927_v58 = vor.u32 %v3984_v53, %v2926_v52  ;;  %v2654_v59 = vld [vmem:[#allocation4 + $0x28] sm:$0xf]  ;;  %v3916_v60 = vld [vmem:[#allocation4 + $0x34] sm:$0xf0]  ;;  %v3055_v62 = vor.u32 %v4016_v55, %v3054_v54 }
  0x94   :  { %1832 = vmatpush.bf16.msra.mxu0 %v2735_v1  ;;  %v2782_v61 = vld [vmem:[#allocation4 + $0x128] sm:$0xf]  ;;  %v3948_v0 = vld [vmem:[#allocation4 + $0x134] sm:$0xf0]  ;;  %v2655_v7 = vor.u32 %v3916_v60, %v2654_v59 }
  0x95   :  { %1845 = vmatpush.bf16.msra.mxu1 %v2863_v2  ;;  %v2910_v1 = vld [vmem:[#allocation4 + $0x228] sm:$0xf]  ;;  %v3980_v2 = vld [vmem:[#allocation4 + $0x234] sm:$0xf0]  ;;  %v2783_v10 = vor.u32 %v3948_v0, %v2782_v61 }
  0x96   :  { %1858 = vmatpush.bf16.msra.mxu2 %v2991_v3  ;;  %v3038_v3 = vld [vmem:[#allocation4 + $0x328] sm:$0xf]  ;;  %v4012_v6 = vld [vmem:[#allocation4 + $0x334] sm:$0xf0]  ;;  %v2911_v11 = vor.u32 %v3980_v2, %v2910_v1 }
  0x97   :  { %1871 = vmatpush.bf16.msra.mxu3 %v3119_v9  ;;  %v2638_v8 = vld [vmem:[#allocation4 + $0x8] sm:$0xf]  ;;  %v3912_v9 = vld [vmem:[#allocation4 + $0x14] sm:$0xf0] }
  0x98   :  { %1833 = vmatpush.bf16.msra.mxu0 %v2719_v15  ;;  %v2766_v12 = vld [vmem:[#allocation4 + $0x108] sm:$0xf]  ;;  %v3944_v13 = vld [vmem:[#allocation4 + $0x114] sm:$0xf0]  ;;  %v3039_v15 = vor.u32 %v4012_v6, %v3038_v3  ;;  %v2639_v23 = vor.u32 %v3912_v9, %v2638_v8 }
  0x99   :  { %1846 = vmatpush.bf16.msra.mxu1 %v2847_v16  ;;  %v2894_v14 = vld [vmem:[#allocation4 + $0x208] sm:$0xf]  ;;  %v3976_v16 = vld [vmem:[#allocation4 + $0x214] sm:$0xf0]  ;;  %v2767_v27 = vor.u32 %v3944_v13, %v2766_v12 }
  0x9a   :  { %1859 = vmatpush.bf16.msra.mxu2 %v2975_v18  ;;  %v3022_v18 = vld [vmem:[#allocation4 + $0x308] sm:$0xf]  ;;  %v4008_v19 = vld [vmem:[#allocation4 + $0x314] sm:$0xf0] }
  0x9b   :  { %1872 = vmatpush.bf16.msra.mxu3 %v3103_v22  ;;  %v3262_v20 = vld [vmem:[#allocation4 + $0x4e8] sm:$0xf]  ;;  %v4068_v21 = vld [vmem:[#allocation4 + $0x4f4] sm:$0xf0]  ;;  %v3023_v32 = vor.u32 %v4008_v19, %v3022_v18 }
  0x9c   :  { %1834 = vmatpush.bf16.msra.mxu0 %v2703_v28  ;;  %v3390_v22 = vld [vmem:[#allocation4 + $0x5e8] sm:$0xf]  ;;  %v4100_v24 = vld [vmem:[#allocation4 + $0x5f4] sm:$0xf0]  ;;  %v2895_v28 = vor.u32 %v3976_v16, %v2894_v14  ;;  %v3263_v33 = vor.u32 %v4068_v21, %v3262_v20 }
  0x9d   :  { %1847 = vmatpush.bf16.msra.mxu1 %v2831_v29  ;;  %v3518_v25 = vld [vmem:[#allocation4 + $0x6e8] sm:$0xf]  ;;  %v4132_v26 = vld [vmem:[#allocation4 + $0x6f4] sm:$0xf0]  ;;  %v3391_v34 = vor.u32 %v4100_v24, %v3390_v22 }
  0x9e   :  { %1860 = vmatpush.bf16.msra.mxu2 %v2959_v30  ;;  %v3646_v29 = vld [vmem:[#allocation4 + $0x7e8] sm:$0xf]  ;;  %v4164_v30 = vld [vmem:[#allocation4 + $0x7f4] sm:$0xf0] }
  0x9f   :  { %1873 = vmatpush.bf16.msra.mxu3 %v3087_v35  ;;  %v3519_v35 = vor.u32 %v4132_v26, %v3518_v25  ;;  %v3246_v36 = vld [vmem:[#allocation4 + $0x4c8] sm:$0xf]  ;;  %v4064_v39 = vld [vmem:[#allocation4 + $0x4d4] sm:$0xf0]  ;;  %v3647_v42 = vor.u32 %v4164_v30, %v3646_v29 }
  0xa0   :  { %1835 = vmatpush.bf16.msra.mxu0 %v2687_v44  ;;  %v3374_v41 = vld [vmem:[#allocation4 + $0x5c8] sm:$0xf]  ;;  %v4096_v43 = vld [vmem:[#allocation4 + $0x5d4] sm:$0xf0]  ;;  %v3247_v48 = vor.u32 %v4064_v39, %v3246_v36 }
  0xa1   :  { %1848 = vmatpush.bf16.msra.mxu1 %v2815_v45  ;;  %v3502_v44 = vld [vmem:[#allocation4 + $0x6c8] sm:$0xf]  ;;  %v4128_v45 = vld [vmem:[#allocation4 + $0x6d4] sm:$0xf0]  ;;  %v3375_v49 = vor.u32 %v4096_v43, %v3374_v41 }
  0xa2   :  { %1861 = vmatpush.bf16.msra.mxu2 %v2943_v46  ;;  %v3630_v46 = vld [vmem:[#allocation4 + $0x7c8] sm:$0xf]  ;;  %v4160_v47 = vld [vmem:[#allocation4 + $0x7d4] sm:$0xf0] }
  0xa3   :  { %1874 = vmatpush.bf16.msra.mxu3 %v3071_v50  ;;  %v3503_v50 = vor.u32 %v4128_v45, %v3502_v44  ;;  %v3230_v51 = vld [vmem:[#allocation4 + $0x4a8] sm:$0xf]  ;;  %v4060_v52 = vld [vmem:[#allocation4 + $0x4b4] sm:$0xf0]  ;;  %v3631_v54 = vor.u32 %v4160_v47, %v3630_v46 }
  0xa4   :  { %1836 = vmatpush.bf16.msra.mxu0 %v2671_v56  ;;  %v3358_v53 = vld [vmem:[#allocation4 + $0x5a8] sm:$0xf]  ;;  %v4092_v55 = vld [vmem:[#allocation4 + $0x5b4] sm:$0xf0]  ;;  %v3231_v60 = vor.u32 %v4060_v52, %v3230_v51 }
  0xa5   :  { %1849 = vmatpush.bf16.msra.mxu1 %v2799_v57  ;;  %v3486_v56 = vld [vmem:[#allocation4 + $0x6a8] sm:$0xf]  ;;  %v4124_v57 = vld [vmem:[#allocation4 + $0x6b4] sm:$0xf0]  ;;  %v3359_v61 = vor.u32 %v4092_v55, %v3358_v53 }
  0xa6   :  { %1862 = vmatpush.bf16.msra.mxu2 %v2927_v58  ;;  %v3614_v58 = vld [vmem:[#allocation4 + $0x7a8] sm:$0xf]  ;;  %v4156_v59 = vld [vmem:[#allocation4 + $0x7b4] sm:$0xf0] }
  0xa7   :  { %1875 = vmatpush.bf16.msra.mxu3 %v3055_v62  ;;  %v3487_v62 = vor.u32 %v4124_v57, %v3486_v56  ;;  %v3214_v0 = vld [vmem:[#allocation4 + $0x488] sm:$0xf]  ;;  %v4056_v1 = vld [vmem:[#allocation4 + $0x494] sm:$0xf0]  ;;  %v3615_v3 = vor.u32 %v4156_v59, %v3614_v58 }
  0xa8   :  { %1837 = vmatpush.bf16.msra.mxu0 %v2655_v7  ;;  %v3342_v2 = vld [vmem:[#allocation4 + $0x588] sm:$0xf]  ;;  %v4088_v6 = vld [vmem:[#allocation4 + $0x594] sm:$0xf0] }
  0xa9   :  { %1850 = vmatpush.bf16.msra.mxu1 %v2783_v10  ;;  %v3470_v7 = vld [vmem:[#allocation4 + $0x688] sm:$0xf]  ;;  %v4120_v8 = vld [vmem:[#allocation4 + $0x694] sm:$0xf0]  ;;  %v3343_v12 = vor.u32 %v4088_v6, %v3342_v2 }
  0xaa   :  { %1863 = vmatpush.bf16.msra.mxu2 %v2911_v11  ;;  %v3598_v9 = vld [vmem:[#allocation4 + $0x788] sm:$0xf]  ;;  %v4152_v10 = vld [vmem:[#allocation4 + $0x794] sm:$0xf0]  ;;  %v3215_v11 = vor.u32 %v4056_v1, %v3214_v0  ;;  %v3471_v13 = vor.u32 %v4120_v8, %v3470_v7 }
  0xab   :  { %1876 = vmatpush.bf16.msra.mxu3 %v3039_v15  ;;  %v3198_v14 = vld [vmem:[#allocation4 + $0x468] sm:$0xf]  ;;  %v4052_v15 = vld [vmem:[#allocation4 + $0x474] sm:$0xf0]  ;;  %v3599_v18 = vor.u32 %v4152_v10, %v3598_v9 }
  0xac   :  { %1838 = vmatpush.bf16.msra.mxu0 %v2639_v23  ;;  %v3326_v16 = vld [vmem:[#allocation4 + $0x568] sm:$0xf]  ;;  %v4084_v19 = vld [vmem:[#allocation4 + $0x574] sm:$0xf0]  ;;  %v3199_v25 = vor.u32 %v4052_v15, %v3198_v14  ;;  %v3970_v14 = vld [vmem:[#allocation4 + $0x1ec] sm:$0xf] }
  0xad   :  { %1851 = vmatpush.bf16.msra.mxu1 %v2767_v27  ;;  %v3454_v20 = vld [vmem:[#allocation4 + $0x668] sm:$0xf]  ;;  %v4116_v21 = vld [vmem:[#allocation4 + $0x674] sm:$0xf0]  ;;  %v3327_v26 = vor.u32 %v4084_v19, %v3326_v16  ;;  %v4002_v19 = vld [vmem:[#allocation4 + $0x2ec] sm:$0xf] }
  0xae   :  { %1864 = vmatpush.bf16.msra.mxu2 %v2895_v28  ;;  %v3582_v22 = vld [vmem:[#allocation4 + $0x768] sm:$0xf]  ;;  %v4148_v23 = vld [vmem:[#allocation4 + $0x774] sm:$0xf0]  ;;  %v3455_v27 = vor.u32 %v4116_v21, %v3454_v20  ;;  %v3008_v20 = vld [vmem:[#allocation4 + $0x2f8] sm:$0xf0] }
  0xaf   :  { %1877 = vmatpush.bf16.msra.mxu3 %v3023_v32  ;;  %1839 = vmatmul.bf16.vlgmr.msra.gmra.mxu0 %v4354_v4  ;;  %v3182_v28 = vld [vmem:[#allocation4 + $0x448] sm:$0xf]  ;;  %v4048_v29 = vld [vmem:[#allocation4 + $0x454] sm:$0xf0]  ;;  %v1645_v32 = vpop.f32.mrf.mxu1 }
  0xb0   :  { %1883 = vmatpush.bf16.msrb.mxu0 %v3263_v33  ;;  %1852 = vmatmul.bf16.vlgmr.msra.gmra.mxu1 %v4363_v17  ;;  %v3310_v30 = vld [vmem:[#allocation4 + $0x548] sm:$0xf]  ;;  %v3583_v33 = vor.u32 %v4148_v23, %v3582_v22  ;;  %v4112_v36 = vld [vmem:[#allocation4 + $0x654] sm:$0xf0]  ;;  %v3183_v44 = vor.u32 %v4048_v29, %v3182_v28  ;;  %v4034_v23 = vld [vmem:[#allocation4 + $0x3ec] sm:$0xf]  ;;  %v3011_v29 = vor.u32 %v4002_v19, %v3008_v20 }
  0xb1   :  { %1896 = vmatpush.bf16.msrb.mxu1 %v3391_v34  ;;  %1865 = vmatmul.bf16.vlgmr.msra.gmra.mxu2 %v4346_v63  ;;  %v4080_v34 = vld [vmem:[#allocation4 + $0x554] sm:$0xf0]  ;;  %v3566_v41 = vld [vmem:[#allocation4 + $0x748] sm:$0xf]  ;;  %v3986_v19 = vld [vmem:[#allocation4 + $0x26c] sm:$0xf] }
  0xb2   :  { %1909 = vmatpush.bf16.msrb.mxu2 %v3519_v35  ;;  %1878 = vmatmul.bf16.vlgmr.msra.gmra.mxu3 %v4356_v5  ;;  %v3438_v35 = vld [vmem:[#allocation4 + $0x648] sm:$0xf]  ;;  %v3311_v46 = vor.u32 %v4080_v34, %v3310_v30  ;;  %v4076_v52 = vld [vmem:[#allocation4 + $0x534] sm:$0xf0]  ;;  %v3934_v30 = vld [vmem:[#allocation4 + $0xcc] sm:$0xf] }
  0xb3   :  { %1922 = vmatpush.bf16.msrb.mxu3 %v3647_v42  ;;  %v4144_v42 = vld [vmem:[#allocation4 + $0x754] sm:$0xf0]  ;;  %v3439_v47 = vor.u32 %v4112_v36, %v3438_v35  ;;  %v3422_v53 = vld [vmem:[#allocation4 + $0x628] sm:$0xf]  ;;  %v2864_v35 = vld [vmem:[#allocation4 + $0x1d8] sm:$0xf0] }
  0xb4   :  { %1884 = vmatpush.bf16.msrb.mxu0 %v3247_v48  ;;  %v3166_v48 = vld [vmem:[#allocation4 + $0x428] sm:$0xf]  ;;  %v3567_v51 = vor.u32 %v4144_v42, %v3566_v41  ;;  %v1671_v55 = vpop.f32.mrf.mxu3  ;;  %v4140_v57 = vld [vmem:[#allocation4 + $0x734] sm:$0xf0]  ;;  %v3998_v36 = vld [vmem:[#allocation4 + $0x2cc] sm:$0xf] }
  0xb5   :  { %1897 = vmatpush.bf16.msrb.mxu1 %v3375_v49  ;;  %v4044_v49 = vld [vmem:[#allocation4 + $0x434] sm:$0xf0]  ;;  %v3550_v56 = vld [vmem:[#allocation4 + $0x728] sm:$0xf]  ;;  %v4030_v41 = vld [vmem:[#allocation4 + $0x3cc] sm:$0xf] }
  0xb6   :  { %1910 = vmatpush.bf16.msrb.mxu2 %v3503_v50  ;;  %v3294_v50 = vld [vmem:[#allocation4 + $0x528] sm:$0xf]  ;;  %v3551_v8 = vor.u32 %v4140_v57, %v3550_v56  ;;  %v4104_v9 = vld [vmem:[#allocation4 + $0x614] sm:$0xf0]  ;;  %v3120_v42 = vld [vmem:[#allocation4 + $0x3d8] sm:$0xf0] }
  0xb7   :  { %1923 = vmatpush.bf16.msrb.mxu3 %v3631_v54  ;;  %v1632_v24 = vpop.f32.mrf.mxu0  ;;  %v4108_v54 = vld [vmem:[#allocation4 + $0x634] sm:$0xf0]  ;;  %v3295_v0 = vor.u32 %v4076_v52, %v3294_v50  ;;  %v3278_v2 = vld [vmem:[#allocation4 + $0x508] sm:$0xf]  ;;  %v1647_v7 = vpop.f32.mrf.mxu1  ;;  %v2848_v50 = vld [vmem:[#allocation4 + $0x1b8] sm:$0xf0] }
  0xb8   :  { %1885 = vmatpush.bf16.msrb.mxu0 %v3231_v60  ;;  %v1646_v39 = vadd.f32 %v1645_v32, %v1632_v24  ;;  %v3167_v60 = vor.u32 %v4044_v49, %v3166_v48  ;;  %v3423_v1 = vor.u32 %v4108_v54, %v3422_v53  ;;  %v3406_v6 = vld [vmem:[#allocation4 + $0x608] sm:$0xf]  ;;  %v3136_v24 = vld [vmem:[#allocation4 + $0x3f8] sm:$0xf0]  ;;  %v3962_v48 = vld [vmem:[#allocation4 + $0x1ac] sm:$0xf]  ;;  %v3123_v49 = vor.u32 %v4030_v41, %v3120_v42 }
  0xb9   :  { %1898 = vmatpush.bf16.msrb.mxu1 %v3359_v61  ;;  %v3150_v61 = vld [vmem:[#allocation4 + $0x408] sm:$0xf]  ;;  %v3407_v22 = vor.u32 %v4104_v9, %v3406_v6  ;;  %v2736_v32 = vld [vmem:[#allocation4 + $0xd8] sm:$0xf0]  ;;  %v3139_v34 = vor.u32 %v4034_v23, %v3136_v24  ;;  %v4026_v53 = vld [vmem:[#allocation4 + $0x3ac] sm:$0xf]  ;;  %v2851_v56 = vor.u32 %v3962_v48, %v2848_v50 }
  0xba   :  { %1911 = vmatpush.bf16.msrb.mxu2 %v3487_v62  ;;  %v4040_v62 = vld [vmem:[#allocation4 + $0x414] sm:$0xf0]  ;;  %v3534_v10 = vld [vmem:[#allocation4 + $0x708] sm:$0xf]  ;;  %v2976_v52 = vld [vmem:[#allocation4 + $0x2b8] sm:$0xf0] }
  0xbb   :  { %1924 = vmatpush.bf16.msrb.mxu3 %v3615_v3  ;;  %v4072_v3 = vld [vmem:[#allocation4 + $0x514] sm:$0xf0]  ;;  %v3151_v16 = vor.u32 %v4040_v62, %v3150_v61  ;;  %v3104_v54 = vld [vmem:[#allocation4 + $0x3b8] sm:$0xf0]  ;;  %v3958_v61 = vld [vmem:[#allocation4 + $0x18c] sm:$0xf] }
  0xbc   :  { %1886 = vmatpush.bf16.msrb.mxu0 %v3215_v11  ;;  %v1658_v43 = vpop.f32.mrf.mxu2  ;;  %v4136_v11 = vld [vmem:[#allocation4 + $0x714] sm:$0xf0]  ;;  %v3279_v21 = vor.u32 %v4072_v3, %v3278_v2  ;;  %v3107_v62 = vor.u32 %v4026_v53, %v3104_v54  ;;  %v2960_v2 = vld [vmem:[#allocation4 + $0x298] sm:$0xf0]  ;;  %v4022_v3 = vld [vmem:[#allocation4 + $0x38c] sm:$0xf] }
  0xbd   :  { %1899 = vmatpush.bf16.msrb.mxu1 %v3343_v12  ;;  %v1659_v45 = vadd.f32 %v1658_v43, %v1646_v39  ;;  %v3938_v12 = vld [vmem:[#allocation4 + $0xec] sm:$0xf]  ;;  %v2992_v39 = vld [vmem:[#allocation4 + $0x2d8] sm:$0xf0]  ;;  %v2739_v43 = vor.u32 %v3934_v30, %v2736_v32 }
  0xbe   :  { %1912 = vmatpush.bf16.msrb.mxu2 %v3471_v13  ;;  %v2752_v13 = vld [vmem:[#allocation4 + $0xf8] sm:$0xf0]  ;;  %v3978_v53 = vld [vmem:[#allocation4 + $0x22c] sm:$0xf] }
  0xbf   :  { %1925 = vmatpush.bf16.msrb.mxu3 %v3599_v18  ;;  %v4403_v58 = vadd.f32 %v1671_v55, %v1659_v45  ;;  %v1634_v59 = vpop.f32.mrf.mxu0  ;;  %v2880_v18 = vld [vmem:[#allocation4 + $0x1f8] sm:$0xf0]  ;;  %v2995_v45 = vor.u32 %v3998_v36, %v2992_v39  ;;  %v4014_v39 = vld [vmem:[#allocation4 + $0x34c] sm:$0xf] }
  0xc0   :  { %1887 = vmatpush.bf16.msrb.mxu0 %v3199_v25  ;;  %v3535_v25 = vor.u32 %v4136_v11, %v3534_v10  ;;  %v2883_v28 = vor.u32 %v3970_v14, %v2880_v18  ;;  %v3926_v59 = vld [vmem:[#allocation4 + $0x8c] sm:$0xf]  ;;  %v3088_v6 = vld [vmem:[#allocation4 + $0x398] sm:$0xf0] }
  0xc1   :  { %1900 = vmatpush.bf16.msrb.mxu1 %v3327_v26  ;;  %v2755_v26 = vor.u32 %v3938_v12, %v2752_v13  ;;  %v3922_v12 = vld [vmem:[#allocation4 + $0x6c] sm:$0xf]  ;;  %v2688_v13 = vld [vmem:[#allocation4 + $0x78] sm:$0xf0] }
  0xc2   :  { %1913 = vmatpush.bf16.msrb.mxu2 %v3455_v27  ;;  %v1673_v27 = vpop.f32.mrf.mxu3  ;;  %v3954_v14 = vld [vmem:[#allocation4 + $0x16c] sm:$0xf]  ;;  %v2816_v18 = vld [vmem:[#allocation4 + $0x178] sm:$0xf0]  ;;  %v2691_v24 = vor.u32 %v3922_v12, %v2688_v13 }
  0xc3   :  { %1926 = vmatpush.bf16.msrb.mxu3 %v3583_v33  ;;  %v3966_v33 = vld [vmem:[#allocation4 + $0x1cc] sm:$0xf]  ;;  %v2944_v20 = vld [vmem:[#allocation4 + $0x278] sm:$0xf0] }
  0xc4   :  { %1888 = vmatpush.bf16.msrb.mxu0 %v3183_v44  ;;  %v1660_v15 = vpop.f32.mrf.mxu2  ;;  %v2867_v44 = vor.u32 %v3966_v33, %v2864_v35  ;;  %v2800_v33 = vld [vmem:[#allocation4 + $0x158] sm:$0xf0]  ;;  %v4098_v13 = vld [vmem:[#allocation4 + $0x5ec] sm:$0xf] }
  0xc5   :  { %1901 = vmatpush.bf16.msrb.mxu1 %v3311_v46  ;;  %v3930_v46 = vld [vmem:[#allocation4 + $0xac] sm:$0xf]  ;;  %v2928_v35 = vld [vmem:[#allocation4 + $0x258] sm:$0xf0] }
  0xc6   :  { %1914 = vmatpush.bf16.msrb.mxu2 %v3439_v47  ;;  %v2720_v47 = vld [vmem:[#allocation4 + $0xb8] sm:$0xf0] }
  0xc7   :  { %1927 = vmatpush.bf16.msrb.mxu3 %v3567_v51  ;;  %v3994_v51 = vld [vmem:[#allocation4 + $0x2ac] sm:$0xf]  ;;  %v2723_v55 = vor.u32 %v3930_v46, %v2720_v47  ;;  %v3056_v41 = vld [vmem:[#allocation4 + $0x358] sm:$0xf0] }
  0xc8   :  { %1889 = vmatpush.bf16.msrb.mxu0 %v3167_v60  ;;  %v2979_v57 = vor.u32 %v3994_v51, %v2976_v52  ;;  %v2704_v60 = vld [vmem:[#allocation4 + $0x98] sm:$0xf0]  ;;  %v3914_v47 = vld [vmem:[#allocation4 + $0x2c] sm:$0xf]  ;;  %v3059_v51 = vor.u32 %v4014_v39, %v3056_v41 }
  0xc9   :  { %1902 = vmatpush.bf16.msrb.mxu1 %v3295_v0  ;;  %v2832_v0 = vld [vmem:[#allocation4 + $0x198] sm:$0xf0]  ;;  %v2707_v7 = vor.u32 %v3926_v59, %v2704_v60  ;;  %v3910_v59 = vld [vmem:[#allocation4 + $0xc] sm:$0xf] }
  0xca   :  { %1915 = vmatpush.bf16.msrb.mxu2 %v3423_v1  ;;  %v3990_v1 = vld [vmem:[#allocation4 + $0x28c] sm:$0xf]  ;;  %v2835_v9 = vor.u32 %v3958_v61, %v2832_v0  ;;  %v2656_v48 = vld [vmem:[#allocation4 + $0x38] sm:$0xf0] }
  0xcb   :  { %1928 = vmatpush.bf16.msrb.mxu3 %v3551_v8  ;;  %v2963_v10 = vor.u32 %v3990_v1, %v2960_v2  ;;  %v2784_v52 = vld [vmem:[#allocation4 + $0x138] sm:$0xf0]  ;;  %v3942_v0 = vld [vmem:[#allocation4 + $0x10c] sm:$0xf] }
  0xcc   :  { %1890 = vmatpush.bf16.msrb.mxu0 %v3151_v16  ;;  %v3091_v16 = vor.u32 %v4022_v3, %v3088_v6  ;;  %v2912_v54 = vld [vmem:[#allocation4 + $0x238] sm:$0xf0]  ;;  %v3974_v2 = vld [vmem:[#allocation4 + $0x20c] sm:$0xf] }
  0xcd   :  { %1903 = vmatpush.bf16.msrb.mxu1 %v3279_v21  ;;  %v1697_v15 = vpop.f32.mrf.mxu1  ;;  %v4018_v21 = vld [vmem:[#allocation4 + $0x36c] sm:$0xf]  ;;  %v2640_v60 = vld [vmem:[#allocation4 + $0x18] sm:$0xf0] }
  0xce   :  { %1916 = vmatpush.bf16.msrb.mxu2 %v3407_v22  ;;  %v3072_v22 = vld [vmem:[#allocation4 + $0x378] sm:$0xf0] }
  0xcf   :  { %1929 = vmatpush.bf16.msrb.mxu3 %v3535_v25  ;;  %1891 = vmatmul.bf16.vlgmr.msrb.gmra.mxu0 %v4381_v37  ;;  %v1684_v8 = vpop.f32.mrf.mxu0  ;;  %v2819_v25 = vor.u32 %v3954_v14, %v2816_v18  ;;  %v3075_v30 = vor.u32 %v4018_v21, %v3072_v22  ;;  %v2768_v1 = vld [vmem:[#allocation4 + $0x118] sm:$0xf0]  ;;  %v2643_v14 = vor.u32 %v3910_v59, %v2640_v60  ;;  %v4162_v21 = vld [vmem:[#allocation4 + $0x7ec] sm:$0xf] }
  0xd0   :  { %1935 = vmatpush.bf16.msra.mxu0 %v2755_v26  ;;  %1904 = vmatmul.bf16.vlgmr.msrb.gmra.mxu1 %v4385_v40  ;;  %v1685_v11 = vadd.f32 %v1684_v8, %v4403_v58  ;;  %v2947_v26 = vor.u32 %v3986_v19, %v2944_v20  ;;  %v3918_v58 = vld [vmem:[#allocation4 + $0x4c] sm:$0xf]  ;;  %v3264_v12 = vld [vmem:[#allocation4 + $0x4f8] sm:$0xf0]  ;;  %v2771_v19 = vor.u32 %v3942_v0, %v2768_v1 }
  0xd1   :  { %1948 = vmatpush.bf16.msra.mxu1 %v2883_v28  ;;  %1917 = vmatmul.bf16.vlgmr.msrb.gmra.mxu2 %v4379_v31  ;;  %v2672_v28 = vld [vmem:[#allocation4 + $0x58] sm:$0xf0]  ;;  %v4006_v8 = vld [vmem:[#allocation4 + $0x30c] sm:$0xf] }
  0xd2   :  { %1961 = vmatpush.bf16.msra.mxu2 %v3011_v29  ;;  %1930 = vmatmul.bf16.vlgmr.msrb.gmra.mxu3 %v4383_v38  ;;  %v1698_v23 = vadd.f32 %v1697_v15, %v1685_v11  ;;  %v3950_v29 = vld [vmem:[#allocation4 + $0x14c] sm:$0xf]  ;;  %v2675_v42 = vor.u32 %v3918_v58, %v2672_v28  ;;  %v3392_v15 = vld [vmem:[#allocation4 + $0x5f8] sm:$0xf0] }
  0xd3   :  { %1974 = vmatpush.bf16.msra.mxu3 %v3139_v34  ;;  %v3982_v34 = vld [vmem:[#allocation4 + $0x24c] sm:$0xf]  ;;  %v3520_v18 = vld [vmem:[#allocation4 + $0x6f8] sm:$0xf0] }
  0xd4   :  { %1936 = vmatpush.bf16.msra.mxu0 %v2739_v43  ;;  %v1710_v27 = vpop.f32.mrf.mxu2  ;;  %v2931_v46 = vor.u32 %v3982_v34, %v2928_v35  ;;  %v4066_v11 = vld [vmem:[#allocation4 + $0x4ec] sm:$0xf]  ;;  %v3648_v22 = vld [vmem:[#allocation4 + $0x7f8] sm:$0xf0] }
  0xd5   :  { %1949 = vmatpush.bf16.msra.mxu1 %v2867_v44  ;;  %v1711_v32 = vadd.f32 %v1710_v27, %v1698_v23  ;;  %v1699_v50 = vpop.f32.mrf.mxu1  ;;  %v4062_v27 = vld [vmem:[#allocation4 + $0x4cc] sm:$0xf]  ;;  %v3248_v58 = vld [vmem:[#allocation4 + $0x4d8] sm:$0xf0] }
  0xd6   :  { %1962 = vmatpush.bf16.msra.mxu2 %v2995_v45  ;;  %v2803_v45 = vor.u32 %v3950_v29, %v2800_v33  ;;  %v4094_v28 = vld [vmem:[#allocation4 + $0x5cc] sm:$0xf]  ;;  %v3651_v29 = vor.u32 %v4162_v21, %v3648_v22  ;;  %v3504_v33 = vld [vmem:[#allocation4 + $0x6d8] sm:$0xf0] }
  0xd7   :  { %1975 = vmatpush.bf16.msra.mxu3 %v3123_v49  ;;  %v1723_v36 = vpop.f32.mrf.mxu3  ;;  %v1686_v44 = vpop.f32.mrf.mxu0  ;;  %v3946_v49 = vld [vmem:[#allocation4 + $0x12c] sm:$0xf]  ;;  %v3632_v35 = vld [vmem:[#allocation4 + $0x7d8] sm:$0xf0] }
  0xd8   :  { %1937 = vmatpush.bf16.msra.mxu0 %v2723_v55  ;;  %v4410_v43 = vadd.f32 %v1723_v36, %v1711_v32  ;;  %v4010_v55 = vld [vmem:[#allocation4 + $0x32c] sm:$0xf]  ;;  %v2787_v61 = vor.u32 %v3946_v49, %v2784_v52  ;;  %v3251_v36 = vor.u32 %v4062_v27, %v3248_v58  ;;  %v3232_v44 = vld [vmem:[#allocation4 + $0x4b8] sm:$0xf0] }
  0xd9   :  { %1950 = vmatpush.bf16.msra.mxu1 %v2851_v56  ;;  %v3040_v56 = vld [vmem:[#allocation4 + $0x338] sm:$0xf0]  ;;  %v4126_v32 = vld [vmem:[#allocation4 + $0x6cc] sm:$0xf] }
  0xda   :  { %1963 = vmatpush.bf16.msra.mxu2 %v2979_v57  ;;  %v2659_v57 = vor.u32 %v3914_v47, %v2656_v48  ;;  %v3043_v6 = vor.u32 %v4010_v55, %v3040_v56  ;;  %v4158_v34 = vld [vmem:[#allocation4 + $0x7cc] sm:$0xf]  ;;  %v3507_v41 = vor.u32 %v4126_v32, %v3504_v33  ;;  %v3360_v47 = vld [vmem:[#allocation4 + $0x5b8] sm:$0xf0] }
  0xdb   :  { %1976 = vmatpush.bf16.msra.mxu3 %v3107_v62  ;;  %v2915_v62 = vor.u32 %v3978_v53, %v2912_v54  ;;  %v4122_v48 = vld [vmem:[#allocation4 + $0x6ac] sm:$0xf]  ;;  %v3488_v49 = vld [vmem:[#allocation4 + $0x6b8] sm:$0xf0] }
  0xdc   :  { %1938 = vmatpush.bf16.msra.mxu0 %v2707_v7  ;;  %v1712_v3 = vpop.f32.mrf.mxu2  ;;  %v2896_v7 = vld [vmem:[#allocation4 + $0x218] sm:$0xf0]  ;;  %v4154_v50 = vld [vmem:[#allocation4 + $0x7ac] sm:$0xf]  ;;  %v3491_v54 = vor.u32 %v4122_v48, %v3488_v49 }
  0xdd   :  { %1951 = vmatpush.bf16.msra.mxu1 %v2835_v9  ;;  %v3024_v9 = vld [vmem:[#allocation4 + $0x318] sm:$0xf0]  ;;  %v2899_v20 = vor.u32 %v3974_v2, %v2896_v7  ;;  %v4054_v55 = vld [vmem:[#allocation4 + $0x48c] sm:$0xf] }
  0xde   :  { %1964 = vmatpush.bf16.msra.mxu2 %v2963_v10  ;;  %v3027_v23 = vor.u32 %v4006_v8, %v3024_v9  ;;  %v3216_v56 = vld [vmem:[#allocation4 + $0x498] sm:$0xf0]  ;;  %v4118_v60 = vld [vmem:[#allocation4 + $0x68c] sm:$0xf] }
  0xdf   :  { %1977 = vmatpush.bf16.msra.mxu3 %v3091_v16  ;;  %v1725_v10 = vpop.f32.mrf.mxu3  ;;  %v4130_v16 = vld [vmem:[#allocation4 + $0x6ec] sm:$0xf]  ;;  %v3344_v59 = vld [vmem:[#allocation4 + $0x598] sm:$0xf0] }
  0xe0   :  { %1939 = vmatpush.bf16.msra.mxu0 %v2691_v24  ;;  %v3267_v24 = vor.u32 %v4066_v11, %v3264_v12  ;;  %v4050_v2 = vld [vmem:[#allocation4 + $0x46c] sm:$0xf]  ;;  %v3200_v3 = vld [vmem:[#allocation4 + $0x478] sm:$0xf0] }
  0xe1   :  { %1952 = vmatpush.bf16.msra.mxu1 %v2819_v25  ;;  %v3395_v25 = vor.u32 %v4098_v13, %v3392_v15  ;;  %v3328_v9 = vld [vmem:[#allocation4 + $0x578] sm:$0xf0]  ;;  %v4114_v10 = vld [vmem:[#allocation4 + $0x66c] sm:$0xf] }
  0xe2   :  { %1965 = vmatpush.bf16.msra.mxu2 %v2947_v26  ;;  %v3523_v26 = vor.u32 %v4130_v16, %v3520_v18  ;;  %v3456_v11 = vld [vmem:[#allocation4 + $0x678] sm:$0xf0]  ;;  %v4146_v12 = vld [vmem:[#allocation4 + $0x76c] sm:$0xf] }
  0xe3   :  { %1978 = vmatpush.bf16.msra.mxu3 %v3075_v30  ;;  %v3376_v30 = vld [vmem:[#allocation4 + $0x5d8] sm:$0xf0]  ;;  %v3459_v16 = vor.u32 %v4114_v10, %v3456_v11  ;;  %v4046_v18 = vld [vmem:[#allocation4 + $0x44c] sm:$0xf]  ;;  %v3702_v10 = vld [vmem:[#allocation6 + $0x60] sm:$0xf] }
  0xe4   :  { %1940 = vmatpush.bf16.msra.mxu0 %v2675_v42  ;;  %v3379_v39 = vor.u32 %v4094_v28, %v3376_v30  ;;  %v4058_v42 = vld [vmem:[#allocation4 + $0x4ac] sm:$0xf]  ;;  %v3584_v13 = vld [vmem:[#allocation4 + $0x778] sm:$0xf0]  ;;  %v4178_v11 = vld [vmem:[#allocation6 + $0x64] sm:$0xf0] }
  0xe5   :  { %1953 = vmatpush.bf16.msra.mxu1 %v2803_v45  ;;  %v4090_v45 = vld [vmem:[#allocation4 + $0x5ac] sm:$0xf]  ;;  %v3235_v52 = vor.u32 %v4058_v42, %v3232_v44  ;;  %v3587_v22 = vor.u32 %v4146_v12, %v3584_v13  ;;  %v3568_v58 = vld [vmem:[#allocation4 + $0x758] sm:$0xf0]  ;;  %v3766_v12 = vld [vmem:[#allocation6 + $0xe0] sm:$0xf] }
  0xe6   :  { %1966 = vmatpush.bf16.msra.mxu2 %v2931_v46  ;;  %v3635_v46 = vor.u32 %v4158_v34, %v3632_v35  ;;  %v3363_v53 = vor.u32 %v4090_v45, %v3360_v47  ;;  %v4142_v27 = vld [vmem:[#allocation4 + $0x74c] sm:$0xf]  ;;  %v3168_v34 = vld [vmem:[#allocation4 + $0x438] sm:$0xf0]  ;;  %v4194_v13 = vld [vmem:[#allocation6 + $0xe4] sm:$0xf0] }
  0xe7   :  { %1979 = vmatpush.bf16.msra.mxu3 %v3059_v51  ;;  %v3616_v51 = vld [vmem:[#allocation4 + $0x7b8] sm:$0xf0]  ;;  %v4042_v33 = vld [vmem:[#allocation4 + $0x42c] sm:$0xf] }
  0xe8   :  { %1941 = vmatpush.bf16.msra.mxu0 %v2659_v57  ;;  %v3619_v57 = vor.u32 %v4154_v50, %v3616_v51  ;;  %v4074_v35 = vld [vmem:[#allocation4 + $0x52c] sm:$0xf]  ;;  %v3424_v44 = vld [vmem:[#allocation4 + $0x638] sm:$0xf0]  ;;  %v3171_v47 = vor.u32 %v4042_v33, %v3168_v34  ;;  %v3742_v33 = vld [vmem:[#allocation6 + $0xb0] sm:$0xf] }
  0xe9   :  { %1954 = vmatpush.bf16.msra.mxu1 %v2787_v61  ;;  %v3472_v61 = vld [vmem:[#allocation4 + $0x698] sm:$0xf0]  ;;  %v4106_v42 = vld [vmem:[#allocation4 + $0x62c] sm:$0xf]  ;;  %v4188_v34 = vld [vmem:[#allocation6 + $0xb4] sm:$0xf0] }
  0xea   :  { %1967 = vmatpush.bf16.msra.mxu2 %v2915_v62  ;;  %v4150_v62 = vld [vmem:[#allocation4 + $0x78c] sm:$0xf]  ;;  %v3475_v1 = vor.u32 %v4118_v60, %v3472_v61  ;;  %v3427_v50 = vor.u32 %v4106_v42, %v3424_v44  ;;  %v3152_v51 = vld [vmem:[#allocation4 + $0x418] sm:$0xf0]  ;;  %v3710_v61 = vld [vmem:[#allocation6 + $0x70] sm:$0xf]  ;;  %v3743_v44 = vor.u32 %v4188_v34, %v3742_v33 }
  0xeb   :  { %1980 = vmatpush.bf16.msra.mxu3 %v3043_v6  ;;  %v4082_v6 = vld [vmem:[#allocation4 + $0x56c] sm:$0xf]  ;;  %v3536_v60 = vld [vmem:[#allocation4 + $0x718] sm:$0xf0]  ;;  %v3670_v42 = vld [vmem:[#allocation6 + $0x20] sm:$0xf] }
  0xec   :  { %1942 = vmatpush.bf16.msra.mxu0 %v2643_v14  ;;  %v4416_v0 = vpop.f32.mrf.mxu0  ;;  %v3203_v14 = vor.u32 %v4050_v2, %v3200_v3  ;;  %v3331_v15 = vor.u32 %v4082_v6, %v3328_v9  ;;  %v4138_v45 = vld [vmem:[#allocation4 + $0x72c] sm:$0xf] }
  0xed   :  { %1955 = vmatpush.bf16.msra.mxu1 %v2771_v19  ;;  %v4418_v7 = vpop.f32.mrf.mxu1  ;;  %v3184_v19 = vld [vmem:[#allocation4 + $0x458] sm:$0xf0]  ;;  %v4038_v48 = vld [vmem:[#allocation4 + $0x40c] sm:$0xf] }
  0xee   :  { %1968 = vmatpush.bf16.msra.mxu2 %v2899_v20  ;;  %v4078_v20 = vld [vmem:[#allocation4 + $0x54c] sm:$0xf]  ;;  %v3187_v28 = vor.u32 %v4046_v18, %v3184_v19  ;;  %v1750_v9 = vadd.f32 %v4418_v7, %v4416_v0  ;;  %v3694_v18 = vld [vmem:[#allocation6 + $0x50] sm:$0xf]  ;;  %v4176_v19 = vld [vmem:[#allocation6 + $0x54] sm:$0xf0] }
  0xef   :  { %1981 = vmatpush.bf16.msra.mxu3 %v3027_v23  ;;  %1943 = vmatmul.bf16.vlgmr.msra.gmra.mxu0 %v4354_v4  ;;  %v3600_v4 = vld [vmem:[#allocation4 + $0x798] sm:$0xf0]  ;;  %v3758_v0 = vld [vmem:[#allocation6 + $0xd0] sm:$0xf]  ;;  %v4192_v7 = vld [vmem:[#allocation6 + $0xd4] sm:$0xf0] }
  0xf0   :  { %1987 = vmatpush.bf16.msrb.mxu0 %v3267_v24  ;;  %1956 = vmatmul.bf16.vlgmr.msra.gmra.mxu1 %v4363_v17  ;;  %v3603_v8 = vor.u32 %v4150_v62, %v3600_v4  ;;  %v3312_v23 = vld [vmem:[#allocation4 + $0x558] sm:$0xf0]  ;;  %v4110_v24 = vld [vmem:[#allocation4 + $0x64c] sm:$0xf]  ;;  %v4180_v62 = vld [vmem:[#allocation6 + $0x74] sm:$0xf0]  ;;  %v3155_v4 = vor.u32 %v4038_v48, %v3152_v51 }
  0xf1   :  { %2000 = vmatpush.bf16.msrb.mxu1 %v3395_v25  ;;  %1969 = vmatmul.bf16.vlgmr.msra.gmra.mxu2 %v4346_v63  ;;  %v4086_v63 = vld [vmem:[#allocation4 + $0x58c] sm:$0xf]  ;;  %v3440_v25 = vld [vmem:[#allocation4 + $0x658] sm:$0xf0]  ;;  %v3315_v30 = vor.u32 %v4078_v20, %v3312_v23  ;;  %v3711_v6 = vor.u32 %v4180_v62, %v3710_v61  ;;  %v3695_v20 = vor.u32 %v4176_v19, %v3694_v18  ;;  %v4210_v48 = vld [vmem:[#allocation6 + $0x164] sm:$0xf0] }
  0xf2   :  { %2013 = vmatpush.bf16.msrb.mxu2 %v3523_v26  ;;  %1982 = vmatmul.bf16.vlgmr.msra.gmra.mxu3 %v4356_v5  ;;  %v3219_v5 = vor.u32 %v4054_v55, %v3216_v56  ;;  %v3347_v17 = vor.u32 %v4086_v63, %v3344_v59  ;;  %v3443_v32 = vor.u32 %v4110_v24, %v3440_v25  ;;  %v4102_v56 = vld [vmem:[#allocation4 + $0x60c] sm:$0xf]  ;;  %v3408_v63 = vld [vmem:[#allocation4 + $0x618] sm:$0xf0]  ;;  %v4174_v24 = vld [vmem:[#allocation6 + $0x44] sm:$0xf0] }
  0xf3   :  { %2026 = vmatpush.bf16.msrb.mxu3 %v3651_v29  ;;  %v3411_v2 = vor.u32 %v4102_v56, %v3408_v63  ;;  %v3759_v23 = vor.u32 %v4192_v7, %v3758_v0  ;;  %v4190_v25 = vld [vmem:[#allocation6 + $0xc4] sm:$0xf0]  ;;  %v4168_v61 = vld [vmem:[#allocation6 + $0x14] sm:$0xf0]  ;;  %v4179_v18 = vld [vmem:[#allocation6 + $0x74] sm:$0xf] }
  0xf4   :  { %1988 = vmatpush.bf16.msrb.mxu0 %v3251_v36  ;;  %v4420_v21 = vpop.f32.mrf.mxu2  ;;  %v1738_v29 = vpop.f32.mrf.mxu0  ;;  %v4186_v51 = vld [vmem:[#allocation6 + $0xa4] sm:$0xf0]  ;;  %v3712_v19 = vld [vmem:[#allocation6 + $0x78] sm:$0xf0] }
  0xf5   :  { %2001 = vmatpush.bf16.msrb.mxu1 %v3379_v39  ;;  %v4422_v26 = vpop.f32.mrf.mxu3  ;;  %v1751_v36 = vpop.f32.mrf.mxu1  ;;  %v3571_v39 = vor.u32 %v4142_v27, %v3568_v58  ;;  %v3678_v58 = vld [vmem:[#allocation6 + $0x30] sm:$0xf]  ;;  %v4172_v29 = vld [vmem:[#allocation6 + $0x34] sm:$0xf0] }
  0xf6   :  { %2014 = vmatpush.bf16.msrb.mxu2 %v3507_v41  ;;  %v3296_v41 = vld [vmem:[#allocation4 + $0x538] sm:$0xf0] }
  0xf7   :  { %2027 = vmatpush.bf16.msrb.mxu3 %v3635_v46  ;;  %v3552_v46 = vld [vmem:[#allocation4 + $0x738] sm:$0xf0]  ;;  %v3299_v49 = vor.u32 %v4074_v35, %v3296_v41  ;;  %v3679_v41 = vor.u32 %v4172_v29, %v3678_v58 }
  0xf8   :  { %1989 = vmatpush.bf16.msrb.mxu0 %v3235_v52  ;;  %v4070_v52 = vld [vmem:[#allocation4 + $0x50c] sm:$0xf]  ;;  %v3555_v55 = vor.u32 %v4138_v45, %v3552_v46  ;;  %v4170_v46 = vld [vmem:[#allocation6 + $0x24] sm:$0xf0] }
  0xf9   :  { %2002 = vmatpush.bf16.msrb.mxu1 %v3363_v53  ;;  %v3280_v53 = vld [vmem:[#allocation4 + $0x518] sm:$0xf0]  ;;  %v3671_v56 = vor.u32 %v4170_v46, %v3670_v42  ;;  %v4175_v42 = vld [vmem:[#allocation6 + $0x54] sm:$0xf]  ;;  %v4200_v46 = vld [vmem:[#allocation6 + $0x114] sm:$0xf0] }
  0xfa   :  { %2015 = vmatpush.bf16.msrb.mxu2 %v3491_v54 }
  0xfb   :  { %2028 = vmatpush.bf16.msrb.mxu3 %v3619_v57  ;;  %v4134_v57 = vld [vmem:[#allocation4 + $0x70c] sm:$0xf] }
  0xfc   :  { %1990 = vmatpush.bf16.msrb.mxu0 %v3219_v5  ;;  %v1764_v54 = vpop.f32.mrf.mxu2  ;;  %v3774_v5 = vld [vmem:[#allocation6 + $0xf0] sm:$0xf]  ;;  %v3539_v3 = vor.u32 %v4134_v57, %v3536_v60 }
  0xfd   :  { %2003 = vmatpush.bf16.msrb.mxu1 %v3347_v17  ;;  %v1777_v59 = vpop.f32.mrf.mxu3  ;;  %v4196_v17 = vld [vmem:[#allocation6 + $0xf4] sm:$0xf0]  ;;  %v3662_v57 = vld [vmem:[#allocation6 + $0x10] sm:$0xf] }
  0xfe   :  { %2016 = vmatpush.bf16.msrb.mxu2 %v3475_v1  ;;  %v3283_v1 = vor.u32 %v4070_v52, %v3280_v53 }
  0xff   :  { %2029 = vmatpush.bf16.msrb.mxu3 %v3603_v8  ;;  %v3775_v8 = vor.u32 %v4196_v17, %v3774_v5  ;;  %v4208_v5 = vld [vmem:[#allocation6 + $0x154] sm:$0xf0] }
 0x100   :  { %1991 = vmatpush.bf16.msrb.mxu0 %v3203_v14  ;;  %v3703_v14 = vor.u32 %v4178_v11, %v3702_v10  ;;  %v3718_v10 = vld [vmem:[#allocation6 + $0x80] sm:$0xf]  ;;  %v4182_v11 = vld [vmem:[#allocation6 + $0x84] sm:$0xf0] }
 0x101   :  { %2004 = vmatpush.bf16.msrb.mxu1 %v3331_v15  ;;  %v1763_v15 = vadd.f32 %v4420_v21, %v1750_v9  ;;  %v3750_v21 = vld [vmem:[#allocation6 + $0xc0] sm:$0xf]  ;;  %v4166_v9 = vld [vmem:[#allocation6 + $0x4] sm:$0xf0] }
 0x102   :  { %2017 = vmatpush.bf16.msrb.mxu2 %v3459_v16  ;;  %v3767_v16 = vor.u32 %v4194_v13, %v3766_v12 }
 0x103   :  { %2030 = vmatpush.bf16.msrb.mxu3 %v3587_v22  ;;  %v1776_v22 = vadd.f32 %v4422_v26, %v1763_v15  ;;  %v3838_v26 = vld [vmem:[#allocation6 + $0x170] sm:$0xf]  ;;  %v3814_v15 = vld [vmem:[#allocation6 + $0x140] sm:$0xf] }
 0x104   :  { %1992 = vmatpush.bf16.msrb.mxu0 %v3187_v28 }
 0x105   :  { %2005 = vmatpush.bf16.msrb.mxu1 %v3315_v30 }
 0x106   :  { %2018 = vmatpush.bf16.msrb.mxu2 %v3443_v32  ;;  %v4212_v32 = vld [vmem:[#allocation6 + $0x174] sm:$0xf0] }
 0x107   :  { %2031 = vmatpush.bf16.msrb.mxu3 %v3571_v39  ;;  %v3839_v35 = vor.u32 %v4212_v32, %v3838_v26  ;;  %v3768_v26 = vld [vmem:[#allocation6 + $0xe8] sm:$0xf0] }
 0x108   :  { %1993 = vmatpush.bf16.msrb.mxu0 %v3171_v47  ;;  %v3830_v47 = vld [vmem:[#allocation6 + $0x160] sm:$0xf] }
 0x109   :  { %2006 = vmatpush.bf16.msrb.mxu1 %v3299_v49  ;;  %v3831_v54 = vor.u32 %v4210_v48, %v3830_v47  ;;  %v4191_v47 = vld [vmem:[#allocation6 + $0xd4] sm:$0xf]  ;;  %v3760_v48 = vld [vmem:[#allocation6 + $0xd8] sm:$0xf0] }
 0x10a   :  { %2019 = vmatpush.bf16.msrb.mxu2 %v3427_v50  ;;  %v3734_v50 = vld [vmem:[#allocation6 + $0xa0] sm:$0xf] }
 0x10b   :  { %2032 = vmatpush.bf16.msrb.mxu3 %v3555_v55  ;;  %v3735_v60 = vor.u32 %v4186_v51, %v3734_v50  ;;  %v3763_v51 = vor.u32 %v4191_v47, %v3760_v48  ;;  %v4201_v47 = vld [vmem:[#allocation6 + $0x124] sm:$0xf]  ;;  %v3800_v48 = vld [vmem:[#allocation6 + $0x128] sm:$0xf0] }
 0x10c   :  { %1994 = vmatpush.bf16.msrb.mxu0 %v3155_v4  ;;  %v1788_v27 = vpop.f32.mrf.mxu0  ;;  %v3822_v4 = vld [vmem:[#allocation6 + $0x150] sm:$0xf] }
 0x10d   :  { %2007 = vmatpush.bf16.msrb.mxu1 %v3283_v1  ;;  %v1789_v28 = vadd.f32 %v1788_v27, %v1776_v22  ;;  %v1801_v30 = vpop.f32.mrf.mxu1  ;;  %v3726_v1 = vld [vmem:[#allocation6 + $0x90] sm:$0xf]  ;;  %v3776_v22 = vld [vmem:[#allocation6 + $0xf8] sm:$0xf0] }
 0x10e   :  { %2020 = vmatpush.bf16.msrb.mxu2 %v3411_v2  ;;  %v4184_v2 = vld [vmem:[#allocation6 + $0x94] sm:$0xf0] }
 0x10f   :  { %2033 = vmatpush.bf16.msrb.mxu3 %v3539_v3  ;;  %1995 = vmatmul.bf16.vlgmr.msrb.gmra.mxu0 %v4381_v37  ;;  %v3686_v37 = vld [vmem:[#allocation6 + $0x40] sm:$0xf]  ;;  %v1802_v39 = vadd.f32 %v1801_v30, %v1789_v28  ;;  %v3823_v3 = vor.u32 %v4208_v5, %v3822_v4  ;;  %v3727_v13 = vor.u32 %v4184_v2, %v3726_v1  ;;  %v3704_v28 = vld [vmem:[#allocation6 + $0x68] sm:$0xf0]  ;;  %v4193_v30 = vld [vmem:[#allocation6 + $0xe4] sm:$0xf] }
 0x110   :  { %2474 = vmatpush.bf16.msra.mxu0 %v3711_v6  ;;  %2008 = vmatmul.bf16.vlgmr.msrb.gmra.mxu1 %v4385_v40  ;;  %v4435_v40 = vld [vmem:[%s4464_s2] sm:$0xf]  ;;  %v4187_v1 = vld [vmem:[#allocation6 + $0xb4] sm:$0xf]  ;;  %v3744_v2 = vld [vmem:[#allocation6 + $0xb8] sm:$0xf0] }
 0x111   :  { %2487 = vmatpush.bf16.msra.mxu1 %v3775_v8  ;;  %2021 = vmatmul.bf16.vlgmr.msrb.gmra.mxu2 %v4379_v31  ;;  %v3687_v31 = vor.u32 %v4174_v24, %v3686_v37  ;;  %v2056_v36 = vperm.slane %v4435_v40, 0  ;;  %v2057_v53 = vperm.slane %v4435_v40, 1  ;;  %v3654_v8 = vld [vmem:[#allocation6] sm:$0xf]  ;;  %v3719_v24 = vor.u32 %v4182_v11, %v3718_v10  ;;  %v3672_v10 = vld [vmem:[#allocation6 + $0x28] sm:$0xf0] }
 0x112   :  { %2034 = vmatmul.bf16.vlgmr.msrb.gmra.mxu3 %v4383_v38  ;;  %v3751_v38 = vor.u32 %v4190_v25, %v3750_v21  ;;  %2500 = vmatpush.bf16.msra.mxu2 %v3839_v35  ;;  %v3715_v21 = vor.u32 %v4179_v18, %v3712_v19  ;;  %v3806_v25 = vld [vmem:[#allocation6 + $0x130] sm:$0xf]  ;;  %v3798_v35 = vld [vmem:[#allocation6 + $0x120] sm:$0xf]  ;;  %v4209_v11 = vld [vmem:[#allocation6 + $0x164] sm:$0xf] }
 0x113   :  { %v2064_v55 = vadd.f32 %v2056_v36, %v4410_v43  ;;  %v3663_v43 = vor.u32 %v4168_v61, %v3662_v57  ;;  %v4202_v36 = vld [vmem:[#allocation6 + $0x124] sm:$0xf0]  ;;  %v4171_v61 = vld [vmem:[#allocation6 + $0x34] sm:$0xf] }
 0x114   :  { %2475 = vmatpush.bf16.msra.mxu0 %v3703_v14  ;;  %v1814_v45 = vpop.f32.mrf.mxu2  ;;  %v1790_v59 = vpop.f32.mrf.mxu0  ;;  %v4198_v57 = vld [vmem:[#allocation6 + $0x104] sm:$0xf0] }
 0x115   :  { %2488 = vmatpush.bf16.msra.mxu1 %v3767_v16  ;;  %v1815_v49 = vadd.f32 %v1814_v45, %v1802_v39  ;;  %v1827_v52 = vpop.f32.mrf.mxu3  ;;  %v1803_v62 = vpop.f32.mrf.mxu1  ;;  %v2072_v6 = vmul.f32 0.2, %v2064_v55  ;;  %v4206_v16 = vld [vmem:[#allocation6 + $0x144] sm:$0xf0]  ;;  %vm2068_vm1 = vcmp.gt.f32.partialorder %v2064_v55, 0.0  ;;  %v3799_v45 = vor.u32 %v4202_v36, %v3798_v35 }
 0x116   :  { %2501 = vmatpush.bf16.msra.mxu2 %v3831_v54  ;;  %v3815_v7 = vor.u32 %v4206_v16, %v3814_v15  ;;  %v3790_v39 = vld [vmem:[#allocation6 + $0x110] sm:$0xf]  ;;  %v4189_v54 = vld [vmem:[#allocation6 + $0xc4] sm:$0xf]  ;;  %v4211_v59 = vld [vmem:[#allocation6 + $0x174] sm:$0xf] }
 0x117   :  { %v1828_v63 = vadd.f32 %v1827_v52, %v1815_v49  ;;  %v2076_v27 = vsel %vm2068_vm1, %v2064_v55, %v2072_v6  ;;  %v3791_v49 = vor.u32 %v4200_v46, %v3790_v39  ;;  %v4173_v52 = vld [vmem:[#allocation6 + $0x44] sm:$0xf]  ;;  %v3752_v55 = vld [vmem:[#allocation6 + $0xc8] sm:$0xf0]  ;;  %v3680_v62 = vld [vmem:[#allocation6 + $0x38] sm:$0xf0] }
 0x118   :  { %2476 = vmatpush.bf16.msra.mxu0 %v3695_v20  ;;  %v4195_v20 = vld [vmem:[#allocation6 + $0xf4] sm:$0xf]  ;;  %v4442_v33 = vpack.c.bf16 %v2076_v27, %v2076_v27 }
 0x119   :  { %2489 = vmatpush.bf16.msra.mxu1 %v3759_v23  ;;  %v2065_v17 = vadd.f32 %v2057_v53, %v1828_v63  ;;  %v3655_v23 = vor.u32 %v4166_v9, %v3654_v8  ;;  %v3779_v58 = vor.u32 %v4195_v20, %v3776_v22  ;;  %v3688_v53 = vld [vmem:[#allocation6 + $0x48] sm:$0xf0]  ;;  %v3782_v63 = vld [vmem:[#allocation6 + $0x100] sm:$0xf]  ;;  %v3683_v8 = vor.u32 %v4171_v61, %v3680_v62  ;;  %v3664_v20 = vld [vmem:[#allocation6 + $0x18] sm:$0xf0] }
 0x11a   :  { %2502 = vmatpush.bf16.msra.mxu2 %v3823_v3  ;;  %v3783_v5 = vor.u32 %v4198_v57, %v3782_v63  ;;  %v3747_v9 = vor.u32 %v4187_v1, %v3744_v2  ;;  %v4197_v57 = vld [vmem:[#allocation6 + $0x104] sm:$0xf]  ;;  %v4226_v1 = vld [vmem:[#allocation6 + $0x1e4] sm:$0xf0] }
 0x11b   :  { %v2073_v12 = vmul.f32 0.2, %v2065_v17  ;;  %vm2069_vm0 = vcmp.gt.f32.partialorder %v2065_v17, 0.0 }
 0x11c   :  { %2477 = vmatpush.bf16.msra.mxu0 %v3687_v31  ;;  %v1816_v14 = vpop.f32.mrf.mxu2  ;;  %v4204_v31 = vld [vmem:[#allocation6 + $0x134] sm:$0xf0] }
 0x11d   :  { %2490 = vmatpush.bf16.msra.mxu1 %v3751_v38  ;;  %v1829_v0 = vpop.f32.mrf.mxu3  ;;  %v2077_v37 = vsel %vm2069_vm0, %v2065_v17, %v2073_v12  ;;  %v4177_v38 = vld [vmem:[#allocation6 + $0x64] sm:$0xf]  ;;  %v3807_v29 = vor.u32 %v4204_v31, %v3806_v25  ;;  %v3840_v17 = vld [vmem:[#allocation6 + $0x178] sm:$0xf0]  ;;  %v3832_v12 = vld [vmem:[#allocation6 + $0x168] sm:$0xf0] }
 0x11e   :  { %2503 = vmatpush.bf16.msra.mxu2 %v3815_v7  ;;  %v4440_v32 = vpack.c.bf16 %v2077_v37, %v2077_v37  ;;  %v3707_v34 = vor.u32 %v4177_v38, %v3704_v28  ;;  %v3843_v6 = vor.u32 %v4211_v59, %v3840_v17  ;;  %v3736_v14 = vld [vmem:[#allocation6 + $0xa8] sm:$0xf0]  ;;  %v3835_v16 = vor.u32 %v4209_v11, %v3832_v12  ;;  %v4167_v0 = vld [vmem:[#allocation6 + $0x14] sm:$0xf]  ;;  %v3824_v37 = vld [vmem:[#allocation6 + $0x158] sm:$0xf0] }
 0x11f   :  { %v3667_v27 = vor.u32 %v4167_v0, %v3664_v20  ;;  %v3656_v28 = vld [vmem:[#allocation6 + $0x8] sm:$0xf0]  ;;  %v3894_v17 = vld [vmem:[#allocation6 + $0x1e0] sm:$0xf]  ;;  %v4222_v12 = vld [vmem:[#allocation6 + $0x1c4] sm:$0xf0] }
 0x120   :  { %2478 = vmatpush.bf16.msra.mxu0 %v3679_v41  ;;  %v3771_v41 = vor.u32 %v4193_v30, %v3768_v26  ;;  %v3816_v30 = vld [vmem:[#allocation6 + $0x148] sm:$0xf0]  ;;  %v4181_v26 = vld [vmem:[#allocation6 + $0x84] sm:$0xf]  ;;  %v3895_v2 = vor.u32 %v4226_v1, %v3894_v17  ;;  %v3878_v11 = vld [vmem:[#allocation6 + $0x1c0] sm:$0xf] }
 0x121   :  { %2491 = vmatpush.bf16.msra.mxu1 %v3743_v44  ;;  %v3696_v44 = vld [vmem:[#allocation6 + $0x58] sm:$0xf0]  ;;  %v3784_v59 = vld [vmem:[#allocation6 + $0x108] sm:$0xf0]  ;;  %v4220_v0 = vld [vmem:[#allocation6 + $0x1b4] sm:$0xf0] }
 0x122   :  { %2504 = vmatpush.bf16.msra.mxu2 %v3807_v29  ;;  %v3699_v50 = vor.u32 %v4175_v42, %v3696_v44  ;;  %v4205_v29 = vld [vmem:[#allocation6 + $0x144] sm:$0xf]  ;;  %v4203_v42 = vld [vmem:[#allocation6 + $0x134] sm:$0xf]  ;;  %v3808_v44 = vld [vmem:[#allocation6 + $0x138] sm:$0xf0]  ;;  %v3787_v61 = vor.u32 %v4197_v57, %v3784_v59 }
 0x123   :  { %v3819_v36 = vor.u32 %v4205_v29, %v3816_v30  ;;  %v3811_v46 = vor.u32 %v4203_v42, %v3808_v44  ;;  %v4214_v29 = vld [vmem:[#allocation6 + $0x184] sm:$0xf0]  ;;  %v3896_v42 = vld [vmem:[#allocation6 + $0x1e8] sm:$0xf0]  ;;  %v3872_v57 = vld [vmem:[#allocation6 + $0x1b8] sm:$0xf0] }
 0x124   :  { %2479 = vmatpush.bf16.msra.mxu0 %v3671_v56  ;;  %v3691_v56 = vor.u32 %v4173_v52, %v3688_v53  ;;  %v3803_v52 = vor.u32 %v4201_v47, %v3800_v48  ;;  %v4223_v47 = vld [vmem:[#allocation6 + $0x1d4] sm:$0xf]  ;;  %v3888_v48 = vld [vmem:[#allocation6 + $0x1d8] sm:$0xf0] }
 0x125   :  { %2492 = vmatpush.bf16.msra.mxu1 %v3735_v60  ;;  %v3755_v60 = vor.u32 %v4189_v54, %v3752_v55  ;;  %v4199_v54 = vld [vmem:[#allocation6 + $0x114] sm:$0xf]  ;;  %v3792_v55 = vld [vmem:[#allocation6 + $0x118] sm:$0xf0] }
 0x126   :  { %2505 = vmatpush.bf16.msra.mxu2 %v3799_v45  ;;  %v3795_v63 = vor.u32 %v4199_v54, %v3792_v55 }
 0x128   :  { %2480 = vmatpush.bf16.msra.mxu0 %v3663_v43  ;;  %v4169_v43 = vld [vmem:[#allocation6 + $0x24] sm:$0xf] }
 0x129   :  { %2493 = vmatpush.bf16.msra.mxu1 %v3727_v13  ;;  %v4185_v13 = vld [vmem:[#allocation6 + $0xa4] sm:$0xf]  ;;  %v3675_v19 = vor.u32 %v4169_v43, %v3672_v10  ;;  %v2058_v10 = vperm.slane %v4435_v40, 2 }
 0x12a   :  { %2506 = vmatpush.bf16.msra.mxu2 %v3791_v49  ;;  %v3739_v7 = vor.u32 %v4185_v13, %v3736_v14  ;;  %v3902_v49 = vld [vmem:[#allocation6 + $0x1f0] sm:$0xf] }
 0x12c   :  { %2481 = vmatpush.bf16.msra.mxu0 %v3655_v23  ;;  %v1840_v4 = vpop.f32.mrf.mxu0  ;;  %v4207_v23 = vld [vmem:[#allocation6 + $0x154] sm:$0xf] }
 0x12d   :  { %2494 = vmatpush.bf16.msra.mxu1 %v3719_v24  ;;  %v1853_v3 = vpop.f32.mrf.mxu1  ;;  %v4183_v24 = vld [vmem:[#allocation6 + $0x94] sm:$0xf]  ;;  %v3827_v31 = vor.u32 %v4207_v23, %v3824_v37  ;;  %v3862_v23 = vld [vmem:[#allocation6 + $0x1a0] sm:$0xf]  ;;  %v4218_v37 = vld [vmem:[#allocation6 + $0x1a4] sm:$0xf0] }
 0x12e   :  { %2507 = vmatpush.bf16.msra.mxu2 %v3783_v5 }
 0x12f   :  { %2482 = vmatmul.bf16.vlgmr.msra.gmra.mxu0 %v4442_v33 }
 0x130   :  { %2526 = vmatpush.bf16.msrb.mxu0 %v3715_v21  ;;  %2495 = vmatmul.bf16.vlgmr.msra.gmra.mxu1 %v4440_v32  ;;  %v3728_v21 = vld [vmem:[#allocation6 + $0x98] sm:$0xf0] }
 0x131   :  { %2539 = vmatpush.bf16.msrb.mxu1 %v3779_v58  ;;  %v4165_v58 = vld [vmem:[#allocation6 + $0x4] sm:$0xf]  ;;  %v3731_v38 = vor.u32 %v4183_v24, %v3728_v21 }
 0x132   :  { %2552 = vmatpush.bf16.msrb.mxu2 %v3843_v6  ;;  %v4224_v6 = vld [vmem:[#allocation6 + $0x1d4] sm:$0xf0] }
 0x134   :  { %2527 = vmatpush.bf16.msrb.mxu0 %v3707_v34  ;;  %v1866_v15 = vpop.f32.mrf.mxu2  ;;  %v1842_v22 = vpop.f32.mrf.mxu0  ;;  %v3720_v34 = vld [vmem:[#allocation6 + $0x88] sm:$0xf0] }
 0x135   :  { %2540 = vmatpush.bf16.msrb.mxu1 %v3771_v41  ;;  %v1879_v18 = vpop.f32.mrf.mxu3  ;;  %v1855_v25 = vpop.f32.mrf.mxu1  ;;  %v3659_v41 = vor.u32 %v4165_v58, %v3656_v28  ;;  %v3723_v45 = vor.u32 %v4181_v26, %v3720_v34  ;;  %v4216_v58 = vld [vmem:[#allocation6 + $0x194] sm:$0xf0]  ;;  %v3846_v28 = vld [vmem:[#allocation6 + $0x180] sm:$0xf]  ;;  %v4227_v26 = vld [vmem:[#allocation6 + $0x1f4] sm:$0xf] }
 0x136   :  { %2553 = vmatpush.bf16.msrb.mxu2 %v3835_v16  ;;  %v3847_v30 = vor.u32 %v4214_v29, %v3846_v28  ;;  %v3904_v34 = vld [vmem:[#allocation6 + $0x1f8] sm:$0xf0] }
 0x138   :  { %2528 = vmatpush.bf16.msrb.mxu0 %v3699_v50  ;;  %v4228_v50 = vld [vmem:[#allocation6 + $0x1f4] sm:$0xf0] }
 0x139   :  { %2541 = vmatpush.bf16.msrb.mxu1 %v3763_v51  ;;  %v1854_v51 = vadd.f32 %v1853_v3, %v1840_v4  ;;  %v3903_v53 = vor.u32 %v4228_v50, %v3902_v49  ;;  %v3891_v49 = vor.u32 %v4223_v47, %v3888_v48 }
 0x13a   :  { %2554 = vmatpush.bf16.msrb.mxu2 %v3827_v31  ;;  %v3863_v31 = vor.u32 %v4218_v37, %v3862_v23  ;;  %v2148_v37 = vld [vmem:[%s4466_s4] sm:$0x3] }
 0x13b   :  { %2513 = vmatpush.bf16.msra.mxu3 %v3903_v53  ;;  %v3880_v53 = vld [vmem:[#allocation6 + $0x1c8] sm:$0xf0] }
 0x13c   :  { %2529 = vmatpush.bf16.msrb.mxu0 %v3691_v56  ;;  %v1868_v35 = vpop.f32.mrf.mxu2  ;;  %v1867_v56 = vadd.f32 %v1866_v15, %v1854_v51  ;;  %v3879_v15 = vor.u32 %v4222_v12, %v3878_v11 }
 0x13d   :  { %2542 = vmatpush.bf16.msrb.mxu1 %v3755_v60  ;;  %v1881_v39 = vpop.f32.mrf.mxu3  ;;  %v3907_v35 = vor.u32 %v4227_v26, %v3904_v34 }
 0x13e   :  { %2555 = vmatpush.bf16.msrb.mxu2 %v3819_v36  ;;  %v1880_v60 = vadd.f32 %v1879_v18, %v1867_v56 }
 0x13f   :  { %2514 = vmatpush.bf16.msra.mxu3 %v3895_v2 }
 0x140   :  { %2530 = vmatpush.bf16.msrb.mxu0 %v3683_v8 }
 0x141   :  { %2543 = vmatpush.bf16.msrb.mxu1 %v3747_v9 }
 0x142   :  { %2556 = vmatpush.bf16.msrb.mxu2 %v3811_v46 }
 0x144   :  { %2531 = vmatpush.bf16.msrb.mxu0 %v3675_v19  ;;  %v3870_v19 = vld [vmem:[#allocation6 + $0x1b0] sm:$0xf] }
 0x145   :  { %2544 = vmatpush.bf16.msrb.mxu1 %v3739_v7  ;;  %v3871_v20 = vor.u32 %v4220_v0, %v3870_v19 }
 0x146   :  { %2557 = vmatpush.bf16.msrb.mxu2 %v3803_v52  ;;  %v4221_v52 = vld [vmem:[#allocation6 + $0x1c4] sm:$0xf] }
 0x147   :  { %v3883_v54 = vor.u32 %v4221_v52, %v3880_v53 }
 0x148   :  { %2532 = vmatpush.bf16.msrb.mxu0 %v3667_v27  ;;  %v3854_v27 = vld [vmem:[#allocation6 + $0x190] sm:$0xf] }
 0x149   :  { %2545 = vmatpush.bf16.msrb.mxu1 %v3731_v38  ;;  %v3855_v38 = vor.u32 %v4216_v58, %v3854_v27 }
 0x14a   :  { %2558 = vmatpush.bf16.msrb.mxu2 %v3795_v63  ;;  %v4219_v63 = vld [vmem:[#allocation6 + $0x1b4] sm:$0xf] }
 0x14b   :  { %v3875_v59 = vor.u32 %v4219_v63, %v3872_v57 }
 0x14c   :  { %2533 = vmatpush.bf16.msrb.mxu0 %v3659_v41  ;;  %v1892_v62 = vpop.f32.mrf.mxu0  ;;  %v4225_v41 = vld [vmem:[#allocation6 + $0x1e4] sm:$0xf] }
 0x14d   :  { %2546 = vmatpush.bf16.msrb.mxu1 %v3723_v45  ;;  %v1893_v4 = vadd.f32 %v1892_v62, %v1880_v60  ;;  %v1905_v5 = vpop.f32.mrf.mxu1  ;;  %v3899_v44 = vor.u32 %v4225_v41, %v3896_v42  ;;  %v4217_v60 = vld [vmem:[#allocation6 + $0x1a4] sm:$0xf] }
 0x14e   :  { %2559 = vmatpush.bf16.msrb.mxu2 %v3787_v61  ;;  %v3864_v61 = vld [vmem:[#allocation6 + $0x1a8] sm:$0xf0] }
 0x14f   :  { %2534 = vmatmul.bf16.vlgmr.msrb.gmra.mxu0 %v4442_v33  ;;  %v1906_v3 = vadd.f32 %v1905_v5, %v1893_v4  ;;  %v3886_v33 = vld [vmem:[#allocation6 + $0x1d0] sm:$0xf]  ;;  %v3867_v62 = vor.u32 %v4217_v60, %v3864_v61  ;;  %v4215_v4 = vld [vmem:[#allocation6 + $0x194] sm:$0xf]  ;;  %v3856_v5 = vld [vmem:[#allocation6 + $0x198] sm:$0xf0] }
 0x150   :  { %2547 = vmatmul.bf16.vlgmr.msrb.gmra.mxu1 %v4440_v32  ;;  %v3887_v32 = vor.u32 %v4224_v6, %v3886_v33  ;;  %v3859_v1 = vor.u32 %v4215_v4, %v3856_v5  ;;  %v3848_v33 = vld [vmem:[#allocation6 + $0x188] sm:$0xf0] }
 0x152   :  { %2515 = vmatpush.bf16.msra.mxu3 %v3887_v32 }
 0x154   :  { %v1918_v8 = vpop.f32.mrf.mxu2  ;;  %v1894_v14 = vpop.f32.mrf.mxu0 }
 0x155   :  { %v1919_v43 = vadd.f32 %v1918_v8, %v1906_v3  ;;  %v1931_v9 = vpop.f32.mrf.mxu3  ;;  %v1907_v16 = vpop.f32.mrf.mxu1  ;;  %v4213_v3 = vld [vmem:[#allocation6 + $0x184] sm:$0xf]  ;;  %v2059_v14 = vperm.slane %v4435_v40, 3 }
 0x156   :  { %2516 = vmatpush.bf16.msra.mxu3 %v3879_v15  ;;  %v3851_v6 = vor.u32 %v4213_v3, %v3848_v33 }
 0x157   :  { %v1932_v13 = vadd.f32 %v1931_v9, %v1919_v43 }
 0x159   :  { %v2066_v18 = vadd.f32 %v2058_v10, %v1932_v13 }
 0x15a   :  { %2517 = vmatpush.bf16.msra.mxu3 %v3871_v20 }
 0x15b   :  { %vm2070_vm2 = vcmp.gt.f32.partialorder %v2066_v18, 0.0  ;;  %v2074_v7 = vmul.f32 0.2, %v2066_v18 }
 0x15c   :  { %v1920_v22 = vpop.f32.mrf.mxu2 }
 0x15d   :  { %v2078_v24 = vsel %vm2070_vm2, %v2066_v18, %v2074_v7  ;;  %v1933_v21 = vpop.f32.mrf.mxu3 }
 0x15e   :  { %v2082_v25 = vpack.c.bf16 %v2078_v24, %v2078_v24  ;;  %2518 = vmatpush.bf16.msra.mxu3 %v3863_v31  ;;  %v2150_v24 = vperm.slane %v2148_v37, 0 }
 0x160   :  { %2508 = vmatmul.bf16.vlgmr.msra.gmra.mxu2 %v2082_v25 }
 0x162   :  { %2519 = vmatpush.bf16.msra.mxu3 %v3855_v38  ;;  %v2151_v38 = vperm.slane %v2148_v37, 1 }
 0x166   :  { %2520 = vmatpush.bf16.msra.mxu3 %v3847_v30 }
 0x16a   :  { %2565 = vmatpush.bf16.msrb.mxu3 %v3907_v35 }
 0x16c   :  { %v1944_v36 = vpop.f32.mrf.mxu0 }
 0x16d   :  { %v1957_v39 = vpop.f32.mrf.mxu1 }
 0x16e   :  { %2566 = vmatpush.bf16.msrb.mxu3 %v3899_v44  ;;  %v1958_v17 = vadd.f32 %v1957_v39, %v1944_v36 }
 0x170   :  { %2560 = vmatmul.bf16.vlgmr.msrb.gmra.mxu2 %v2082_v25 }
 0x172   :  { %2567 = vmatpush.bf16.msrb.mxu3 %v3891_v49 }
 0x174   :  { %v1970_v45 = vpop.f32.mrf.mxu2  ;;  %v1946_v50 = vpop.f32.mrf.mxu0 }
 0x175   :  { %v1983_v46 = vpop.f32.mrf.mxu3  ;;  %v1959_v51 = vpop.f32.mrf.mxu1  ;;  %v1971_v2 = vadd.f32 %v1970_v45, %v1958_v17  ;;  %v2599_v17 = vstv %s4468_s6 }
 0x176   :  { %2568 = vmatpush.bf16.msrb.mxu3 %v3883_v54 }
 0x177   :  { %v1984_v8 = vadd.f32 %v1983_v46, %v1971_v2  ;;  %v2584_v46 = vld [vmem:[%s4467_s5] sm:$0x3] }
 0x178   :  { %v2585_v48 = vunpack.c.l.bf16 %v2584_v46 }
 0x17a   :  { %2569 = vmatpush.bf16.msrb.mxu3 %v3875_v59  ;;  %v2587_v50 = vperm.slane %v2585_v48, 0  ;;  %v2588_v51 = vperm.slane %v2585_v48, 2 }
 0x17c   :  { %v1972_v55 = vpop.f32.mrf.mxu2  ;;  %v2592_v63 = vperm.slane %v2588_v51, 0 }
 0x17d   :  { %v1985_v56 = vpop.f32.mrf.mxu3 }
 0x17e   :  { %2570 = vmatpush.bf16.msrb.mxu3 %v3867_v62  ;;  %v2591_v56 = vperm.slane %v2587_v50, 0 }
 0x182   :  { %2571 = vmatpush.bf16.msrb.mxu3 %v3859_v1 }
 0x186   :  { %2572 = vmatpush.bf16.msrb.mxu3 %v3851_v6 }
 0x18c   :  { %v1996_v32 = vpop.f32.mrf.mxu0 }
 0x18d   :  { %v2009_v43 = vpop.f32.mrf.mxu1  ;;  %v1997_v9 = vadd.f32 %v1996_v32, %v1984_v8 }
 0x18f   :  { %v2010_v10 = vadd.f32 %v2009_v43, %v1997_v9 }
 0x194   :  { %v2022_v11 = vpop.f32.mrf.mxu2  ;;  %v1998_v15 = vpop.f32.mrf.mxu0 }
 0x195   :  { %v2023_v12 = vadd.f32 %v2022_v11, %v2010_v10  ;;  %v2035_v13 = vpop.f32.mrf.mxu3  ;;  %v2011_v16 = vpop.f32.mrf.mxu1 }
 0x197   :  { %v2036_v18 = vadd.f32 %v2035_v13, %v2023_v12 }
 0x199   :  { %v2067_v19 = vadd.f32 %v2059_v14, %v2036_v18 }
 0x19b   :  { %vm2071_vm3 = vcmp.gt.f32.partialorder %v2067_v19, 0.0  ;;  %v2075_v0 = vmul.f32 0.2, %v2067_v19 }
 0x19c   :  { %v2024_v7 = vpop.f32.mrf.mxu2 }
 0x19d   :  { %v2079_v20 = vsel %vm2071_vm3, %v2067_v19, %v2075_v0  ;;  %v2037_v22 = vpop.f32.mrf.mxu3 }
 0x19e   :  { %v2083_v23 = vpack.c.bf16 %v2079_v20, %v2079_v20 }
 0x1a0   :  { %2521 = vmatmul.bf16.vlgmr.msra.gmra.mxu3 %v2083_v23 }
 0x1ac   :  { %v2483_v21 = vpop.f32.mrf.mxu0 }
 0x1ad   :  { %v2484_v25 = vadd.f32 %v2483_v21, %v2150_v24  ;;  %v2496_v31 = vpop.f32.mrf.mxu1 }
 0x1af   :  { %v2497_v40 = vadd.f32 %v2496_v31, %v2484_v25 }
 0x1b0   :  { %2573 = vmatmul.bf16.vlgmr.msrb.gmra.mxu3 %v2083_v23 }
 0x1b4   :  { %v2485_v27 = vpop.f32.mrf.mxu0 }
 0x1b5   :  { %v2498_v58 = vpop.f32.mrf.mxu1 }
 0x1cc   :  { %v2535_v28 = vpop.f32.mrf.mxu0 }
 0x1cd   :  { %v2536_v29 = vadd.f32 %v2535_v28, %v2151_v38  ;;  %v2548_v30 = vpop.f32.mrf.mxu1 }
 0x1cf   :  { %v2549_v26 = vadd.f32 %v2548_v30, %v2536_v29 }
 0x1d4   :  { %v2537_v34 = vpop.f32.mrf.mxu0 }
 0x1d5   :  { %v2550_v35 = vpop.f32.mrf.mxu1 }
 0x1e3   :  { %v2509_v36 = vpop.f32.mrf.mxu2 }
 0x1e4   :  { %v2510_v39 = vadd.f32 %v2509_v36, %v2497_v40 }
 0x1eb   :  { %v2511_v41 = vpop.f32.mrf.mxu2 }
 0x1f3   :  { %v2561_v42 = vpop.f32.mrf.mxu2 }
 0x1f4   :  { %v2562_v52 = vadd.f32 %v2561_v42, %v2549_v26 }
 0x1fb   :  { %v2563_v44 = vpop.f32.mrf.mxu2 }
 0x223   :  { %v2522_v45 = vpop.f32.mrf.mxu3 }
 0x224   :  { %v2523_v49 = vadd.f32 %v2522_v45, %v2510_v39 }
 0x226   :  { %v2580_v53 = vmul.f32 0.2, %v2523_v49  ;;  %vm2578_vm4 = vcmp.gt.f32.partialorder %v2523_v49, 0.0 }
 0x228   :  { %v2582_v59 = vsel %vm2578_vm4, %v2523_v49, %v2580_v53 }
 0x229   :  { %v2593_v61 = vmul.f32 %v2591_v56, %v2582_v59 }
 0x22b   :  { %v2524_v47 = vpop.f32.mrf.mxu3 }
 0x233   :  { %v2574_v54 = vpop.f32.mrf.mxu3 }
 0x234   :  { %v2575_v55 = vadd.f32 %v2574_v54, %v2562_v52 }
 0x236   :  { %vm2579_vm5 = vcmp.gt.f32.partialorder %v2575_v55, 0.0  ;;  %v2581_v57 = vmul.f32 0.2, %v2575_v55 }
 0x238   :  { %v2583_v60 = vsel %vm2579_vm5, %v2575_v55, %v2581_v57 }
 0x239   :  { %v2594_v62 = vmul.f32 %v2592_v63, %v2583_v60 }
 0x23b   :  { %v2576_v4 = vpop.f32.mrf.mxu3  ;;  %v2595_v5 = vadd.f32 %v2594_v62, %v2593_v61 }
 0x23d   :  { %2596 = vadd.xlane.f32.xlu0 %v2595_v5 }
 0x2b0   :  { %v2597_v1 = vpop.xlane.xlu0 %2596 }
 0x2b1   :  { %v2600_v2 = vadd.f32 %v2599_v17, %v2597_v1 }
 0x2b3   :  { %v3908_v3 = vmul.f32 -1.442695, %v2600_v2 }
 0x2b5   :  { %4235 = vpow2.f32 %v3908_v3 }
 0x2bb   :  { %v4236_v33 = vpop.eup %4235 }
 0x2bc   :  { %v2604_v6 = vadd.f32 1.0, %v4236_v33 }
 0x2be   :  { %4237 = vrcp.f32 %v2604_v6  ;;  %v2616_v9 = vand.u32 2147483648, %v2604_v6  ;;  %v2614_v11 = vand.u32 2147483647, %v2604_v6  ;;  %vm2610_vm7 = vweird.f32 %v2604_v6 }
 0x2c0   :  { %v2617_v13 = vor.u32 1.1754944e-38, %v2616_v9  ;;  %vm2615_vm10 = vcmp.eq.f32.partialorder %v2614_v11, 8.507059e+37 }
 0x2c4   :  { %v4238_v8 = vpop.eup %4237 }
 0x2c5   :  { %v2606_v32 = vmul.f32 %v4238_v8, %v2604_v6  ;;  %vm2611_vm6 = vweird.f32 %v4238_v8 }
 0x2c6   :  { %vm2612_vm8 = vmor %vm2610_vm7, %vm2611_vm6 }
 0x2c7   :  { %v2607_v43 = vsub.f32 1.0, %v2606_v32 }
 0x2c9   :  { %v2608_v10 = vmul.f32 %v4238_v8, %v2607_v43 }
 0x2cb   :  { %v2609_v12 = vadd.f32 %v4238_v8, %v2608_v10 }
 0x2cd   :  { %v2613_v14 = vsel %vm2612_vm8, %v4238_v8, %v2609_v12 }
 0x2ce   :  { %v2618_v15 = vsel %vm2615_vm10, %v2617_v13, %v2613_v14 }
 0x2cf   :  { %2621 = vst.msk [vmem:[%s4469_s7] sm:$0xff] %vm2620_vm9, %v2618_v15 }
 0x2d0   :  { %2626 = vsyncpa [#allocation5], 1 }
 0x2d1   :  { %2627 = vsyncpa [#allocation7], 1 }

</bundles_post_ra>
